<compile_context>
chip_gen: v5e
topology: v5e:2x2
jax: 0.10.0
libtpu: 0.0.40
codegen_flags: <defaults>
</compile_context>

<pallas_src>
import jax
import jax.numpy as jnp
import numpy as np
from jax.experimental import pallas as pl
from jax.experimental.pallas import tpu as pltpu

# ----------------------- model config (small, consistent with module) -----------------------
N_FEATURES = 5      # ['lag1_count','dT','minute_of_day','day_of_week','month_of_year']
N_HIDDEN   = 32
N_LAYERS   = 2      # kernel is written for exactly 2 stacked LSTM layers
N_OUTPUTS  = 1
SEQ_LEN    = 8
BATCH      = 8

F_PAD = 8                 # feature dim padded 5 -> 8 (zero columns, exact)
LANES = 4 * N_HIDDEN      # 128: one gate tile is exactly one lane width

# parameter-slab row offsets (all multiples of 8 -> (8,128)-tile aligned slices)
R_WIH0, R_WHH0, R_WIH1, R_WHH1 = 0, 8, 40, 72
R_B0, R_B1 = 104, 112
R_WLIN, R_BLIN = 120, 152
R_WREG, R_BREG = 160, 192
SLAB_ROWS = 200


# ----------------------------------- Pallas kernel ------------------------------------------
def student_count_kernel(x_ref,      # [T*B, F_PAD]   time-major, zero-padded features
                         w_ref,      # [SLAB_ROWS, 128]  packed parameters (see pack_params)
                         out_ref):   # [B, N_OUTPUTS]
    TB = x_ref.shape[0]
    B = out_ref.shape[0]
    T = TB // B
    H = N_HIDDEN

    # Static, tile-aligned slices of the packed parameter slab (zero-cost ref views + load).
    w_ih0 = w_ref[R_WIH0:R_WIH0 + F_PAD, :]      # [8, 128]   (g-cols pre-scaled x2)
    w_hh0 = w_ref[R_WHH0:R_WHH0 + H, :]          # [32, 128]
    w_ih1 = w_ref[R_WIH1:R_WIH1 + H, :]          # [32, 128]
    w_hh1 = w_ref[R_WHH1:R_WHH1 + H, :]          # [32, 128]
    b0    = w_ref[R_B0:R_B0 + 1, :]              # [1, 128]
    b1    = w_ref[R_B1:R_B1 + 1, :]              # [1, 128]
    w_lin = w_ref[R_WLIN:R_WLIN + H, :]          # [32, 128]  (cols >= 32 are zero)
    b_lin = w_ref[R_BLIN:R_BLIN + 1, :]          # [1, 128]
    w_reg = w_ref[R_WREG:R_WREG + H, :]          # [32, 128]  (cols >= N_OUTPUTS are zero)
    b_reg = w_ref[R_BREG:R_BREG + 1, :]          # [1, 128]

    # ---- layer-0 input projection hoisted out of the recurrence: one matmul, bias folded ----
    x_proj = (jnp.dot(x_ref[...], w_ih0, preferred_element_type=jnp.float32)
              + jnp.broadcast_to(b0, (TB, 4 * H)))                         # [T*B, 128]

    # Hoisted bias broadcast (JAX does not CSE broadcast_in_dim across the unroll).
    b1b = jnp.broadcast_to(b1, (B, 4 * H))

    def lstm_step(gates, c):
        # Single full-tile EUP pass; g recovered via tanh(x) == 2*sigmoid(2x) - 1
        # (the g-gate columns of the weights/biases were pre-scaled by 2 host-side).
        sig = jax.nn.sigmoid(gates)
        i = sig[:, 0 * H:1 * H]
        f = sig[:, 1 * H:2 * H]
        g = 2.0 * sig[:, 2 * H:3 * H] - 1.0
        o = sig[:, 3 * H:4 * H]
        c_new = f * c + i * g
        h_new = o * jnp.tanh(c_new)
        return h_new, c_new

    h0 = jnp.zeros((B, H), jnp.float32)
    c0 = jnp.zeros((B, H), jnp.float32)
    h1 = jnp.zeros((B, H), jnp.float32)
    c1 = jnp.zeros((B, H), jnp.float32)
    r1 = b1b                                  # == h1 @ w_hh1 + b1 with h1 == 0

    # Recurrence over time, statically unrolled (SEQ_LEN is small and static), full dataflow
    # visible to the scheduler.  Critical path per step: 1 matmul (layer 0) + 1 K=32 matmul
    # (layer 1); the recurrent layer-1 matmul (r1) runs off the critical path.
    for t in range(T):
        gates0 = x_proj[t * B:(t + 1) * B, :] + jnp.dot(
            h0, w_hh0, preferred_element_type=jnp.float32)
        h0, c0 = lstm_step(gates0, c0)

        gates1 = jnp.dot(h0, w_ih1, preferred_element_type=jnp.float32) + r1
        h1, c1 = lstm_step(gates1, c1)

        if t + 1 < T:   # last r1 is dead -> skip it
            r1 = jnp.dot(h1, w_hh1, preferred_element_type=jnp.float32) + b1b

    # Head: last step of top layer -> Linear -> ReLU -> Linear.
    # Padded lanes of w_lin/b_lin/w_reg are zero, so full-lane arithmetic is exact.
    lin = (jnp.dot(h1, w_lin, preferred_element_type=jnp.float32)
           + jnp.broadcast_to(b_lin, (B, 4 * H)))
    lin = jnp.maximum(lin, 0.0)                                            # ReLU
    res = jnp.dot(lin[:, 0:H], w_reg, preferred_element_type=jnp.float32)  # col 0.. = answer
    out_ref[...] = (res + b_reg)[:, 0:N_OUTPUTS]


# ------------------------------ host-side parameter packing ---------------------------------
def pack_params(params):
    """Pack all parameters into one lane-dense [SLAB_ROWS, 128] f32 slab (done once).

    The g-gate columns (2H:3H) of every LSTM weight/bias are pre-scaled by 2 so the kernel
    can use the single-sigmoid gate trick tanh(x) == 2*sigmoid(2x) - 1.
    """
    H = N_HIDDEN
    assert 4 * H == LANES, "slab layout assumes 4*n_hidden == 128 lanes"
    assert params["w_ih0"].shape[0] <= F_PAD
    gscale = jnp.ones((4 * H,), jnp.float32).at[2 * H:3 * H].set(2.0)

    def pad_block(a, rows):
        a = jnp.asarray(a, jnp.float32)
        return jnp.zeros((rows, LANES), jnp.float32).at[:a.shape[0], :a.shape[1]].set(a)

    slab = jnp.concatenate([
        pad_block(params["w_ih0"] * gscale, F_PAD),   # R_WIH0
        pad_block(params["w_hh0"] * gscale, H),       # R_WHH0
        pad_block(params["w_ih1"] * gscale, H),       # R_WIH1
        pad_block(params["w_hh1"] * gscale, H),       # R_WHH1
        pad_block(params["b0"] * gscale, 8),          # R_B0
        pad_block(params["b1"] * gscale, 8),          # R_B1
        pad_block(params["w_lin"], H),                # R_WLIN
        pad_block(params["b_lin"], 8),                # R_BLIN
        pad_block(params["w_reg"], H),                # R_WREG
        pad_block(params["b_reg"], 8),                # R_BREG
    ], axis=0)
    assert slab.shape == (SLAB_ROWS, LANES)
    return slab


# ------------------------------------- wrapper ----------------------------------------------
def student_count_predictor_forward(x, slab):
    B, T, F = x.shape

    # Time-major + feature padding -> one contiguous [T*B, 8] buffer (single DMA).
    x_tbf = jnp.transpose(x, (1, 0, 2)).reshape(T * B, F).astype(jnp.float32)
    x_pad = jnp.pad(x_tbf, ((0, 0), (0, F_PAD - F)))

    # Advisory cost hint (latency-bound micro-kernel).
    flops = 2 * (T * B * F_PAD * LANES            # hoisted input projection
                 + 3 * T * B * N_HIDDEN * LANES   # w_hh0 / w_ih1 / w_hh1 per step
                 + 2 * B * N_HIDDEN * LANES)      # head
    transcendentals = N_LAYERS * T * B * (4 * N_HIDDEN + N_HIDDEN)
    bytes_accessed = 4 * (x_pad.size + SLAB_ROWS * LANES + B * N_OUTPUTS)
    cost = pl.CostEstimate(flops=flops, transcendentals=transcendentals,
                           bytes_accessed=bytes_accessed)

    # Grid-less call: whole arrays resident in VMEM, no grid-loop scaffolding.
    return pl.pallas_call(
        student_count_kernel,
        out_shape=jax.ShapeDtypeStruct((B, N_OUTPUTS), jnp.float32),
        in_specs=[pl.BlockSpec(memory_space=pltpu.MemorySpace.VMEM),
                  pl.BlockSpec(memory_space=pltpu.MemorySpace.VMEM)],
        out_specs=pl.BlockSpec(memory_space=pltpu.MemorySpace.VMEM),
        cost_estimate=cost,
    )(x_pad, slab)


forward_jit = jax.jit(student_count_predictor_forward)


# ------------------------------ deterministic parameter init --------------------------------
def init_params(key):
    k = 1.0 / np.sqrt(N_HIDDEN)   # PyTorch default uniform(-1/sqrt(H), 1/sqrt(H))
    keys = jax.random.split(key, 16)

    def u(kk, shape):
        return jax.random.uniform(kk, shape, jnp.float32, minval=-k, maxval=k)

    return {
        # LSTM layer 0 (input size = N_FEATURES), stored transposed: [in, 4H], gate order i,f,g,o
        "w_ih0": u(keys[0], (N_FEATURES, 4 * N_HIDDEN)),
        "w_hh0": u(keys[1], (N_HIDDEN, 4 * N_HIDDEN)),
        "b0":    u(keys[2], (1, 4 * N_HIDDEN)) + u(keys[3], (1, 4 * N_HIDDEN)),  # b_ih + b_hh
        # LSTM layer 1 (input size = N_HIDDEN)
        "w_ih1": u(keys[4], (N_HIDDEN, 4 * N_HIDDEN)),
        "w_hh1": u(keys[5], (N_HIDDEN, 4 * N_HIDDEN)),
        "b1":    u(keys[6], (1, 4 * N_HIDDEN)) + u(keys[7], (1, 4 * N_HIDDEN)),
        # linear: H -> H
        "w_lin": u(keys[8], (N_HIDDEN, N_HIDDEN)),
        "b_lin": u(keys[9], (1, N_HIDDEN)),
        # regressor: H -> n_outputs
        "w_reg": u(keys[10], (N_HIDDEN, N_OUTPUTS)),
        "b_reg": u(keys[11], (1, N_OUTPUTS)),
    }


# ------------------------------------ pure-JAX reference ------------------------------------
def reference_forward(x, params):
    H = params["w_hh0"].shape[0]
    B, T, F = x.shape

    def cell(x_t, h, c, w_ih, w_hh, b):
        gates = x_t @ w_ih + h @ w_hh + b
        i = jax.nn.sigmoid(gates[:, 0 * H:1 * H])
        f = jax.nn.sigmoid(gates[:, 1 * H:2 * H])
        g = jnp.tanh(gates[:, 2 * H:3 * H])
        o = jax.nn.sigmoid(gates[:, 3 * H:4 * H])
        c = f * c + i * g
        h = o * jnp.tanh(c)
        return h, c

    h0 = jnp.zeros((B, H)); c0 = jnp.zeros((B, H))
    h1 = jnp.zeros((B, H)); c1 = jnp.zeros((B, H))
    for t in range(T):
        h0, c0 = cell(x[:, t, :], h0, c0, params["w_ih0"], params["w_hh0"], params["b0"])
        h1, c1 = cell(h0, h1, c1, params["w_ih1"], params["w_hh1"], params["b1"])
    lin = jnp.maximum(h1 @ params["w_lin"] + params["b_lin"], 0.0)
    return lin @ params["w_reg"] + params["b_reg"]


# ----------------------------------------- main ----------------------------------------------
if __name__ == "__main__":
    key = jax.random.PRNGKey(0)
    k_x, k_p = jax.random.split(key)

    x = jax.random.normal(k_x, (BATCH, SEQ_LEN, N_FEATURES), jnp.float32)
    params = init_params(k_p)
    slab = pack_params(params)   # one-time host-side packing of all weights/biases

    # TODO(synk): training-time pieces of the module (MSELoss, Adam optimizer, MinMax scaling,
    # pandas-based forecast loop) are host-side logic, not part of the kernel forward pass.

    out = forward_jit(x, slab)
    out = jax.block_until_ready(out)

    ref = reference_forward(x, params)
    # Both kernel and reference use default-precision MXU matmuls (single bf16 pass); the
    # tolerance covers add-order reassociation and the tanh(x)=2*sigmoid(2x)-1 identity's
    # sub-ulp rounding differences propagated through bf16 input rounding.
    np.testing.assert_allclose(np.asarray(out), np.asarray(ref), rtol=1e-4, atol=1e-4)

    print("KERNEL_OK")
</pallas_src>

<mosaic_0001>
module attributes {stable_mosaic.version = 11 : i64} {
  func.func @student_count_kernel(%arg0: memref<64x8xf32, #tpu.memory_space<vmem>>, %arg1: memref<200x128xf32, #tpu.memory_space<vmem>>, %arg2: memref<8x1xf32, #tpu.memory_space<vmem>>) attributes {dimension_semantics = [], scalar_prefetch = 0 : i64, scratch_operands = 0 : i64, tpu.core_type = #tpu.core_type<tc>} {
    %c0 = arith.constant 0 : index
    %c0_0 = arith.constant 0 : index
    %0 = vector.load %arg1[%c0, %c0_0] : memref<200x128xf32, #tpu.memory_space<vmem>>, vector<8x128xf32>
    %c8 = arith.constant 8 : index
    %c0_1 = arith.constant 0 : index
    %1 = vector.load %arg1[%c8, %c0_1] : memref<200x128xf32, #tpu.memory_space<vmem>>, vector<32x128xf32>
    %c40 = arith.constant 40 : index
    %c0_2 = arith.constant 0 : index
    %2 = vector.load %arg1[%c40, %c0_2] : memref<200x128xf32, #tpu.memory_space<vmem>>, vector<32x128xf32>
    %c72 = arith.constant 72 : index
    %c0_3 = arith.constant 0 : index
    %3 = vector.load %arg1[%c72, %c0_3] : memref<200x128xf32, #tpu.memory_space<vmem>>, vector<32x128xf32>
    %c104 = arith.constant 104 : index
    %c0_4 = arith.constant 0 : index
    %4 = vector.load %arg1[%c104, %c0_4] : memref<200x128xf32, #tpu.memory_space<vmem>>, vector<1x128xf32>
    %c112 = arith.constant 112 : index
    %c0_5 = arith.constant 0 : index
    %5 = vector.load %arg1[%c112, %c0_5] : memref<200x128xf32, #tpu.memory_space<vmem>>, vector<1x128xf32>
    %c120 = arith.constant 120 : index
    %c0_6 = arith.constant 0 : index
    %6 = vector.load %arg1[%c120, %c0_6] : memref<200x128xf32, #tpu.memory_space<vmem>>, vector<32x128xf32>
    %c152 = arith.constant 152 : index
    %c0_7 = arith.constant 0 : index
    %7 = vector.load %arg1[%c152, %c0_7] : memref<200x128xf32, #tpu.memory_space<vmem>>, vector<1x128xf32>
    %c160 = arith.constant 160 : index
    %c0_8 = arith.constant 0 : index
    %8 = vector.load %arg1[%c160, %c0_8] : memref<200x128xf32, #tpu.memory_space<vmem>>, vector<32x128xf32>
    %c192 = arith.constant 192 : index
    %c0_9 = arith.constant 0 : index
    %9 = vector.load %arg1[%c192, %c0_9] : memref<200x128xf32, #tpu.memory_space<vmem>>, vector<1x128xf32>
    %c0_10 = arith.constant 0 : index
    %c0_11 = arith.constant 0 : index
    %10 = vector.load %arg0[%c0_10, %c0_11] : memref<64x8xf32, #tpu.memory_space<vmem>>, vector<64x8xf32>
    %cst = arith.constant dense<0.000000e+00> : vector<64x128xf32>
    %11 = tpu.matmul %10, %0, %cst {dimension_numbers = #tpu.dot_dimension_numbers<[1], [0], [0], [1], [0, 0, 1, 1], [], []>} : vector<64x8xf32>, vector<8x128xf32>, vector<64x128xf32> -> vector<64x128xf32>
    %12 = vector.shape_cast %4 : vector<1x128xf32> to vector<1x128xf32>
    %13 = vector.broadcast %12 : vector<1x128xf32> to vector<64x128xf32>
    %14 = arith.addf %11, %13 : vector<64x128xf32>
    %15 = vector.shape_cast %5 : vector<1x128xf32> to vector<1x128xf32>
    %16 = vector.broadcast %15 : vector<1x128xf32> to vector<8x128xf32>
    %cst_12 = arith.constant 0.000000e+00 : f32
    %17 = vector.broadcast %cst_12 : f32 to vector<8x32xf32>
    %cst_13 = arith.constant 0.000000e+00 : f32
    %18 = vector.broadcast %cst_13 : f32 to vector<8x32xf32>
    %cst_14 = arith.constant 0.000000e+00 : f32
    %19 = vector.broadcast %cst_14 : f32 to vector<8x32xf32>
    %20 = vector.extract_strided_slice %14 {offsets = [0, 0], sizes = [8, 128], strides = [1, 1]} : vector<64x128xf32> to vector<8x128xf32>
    %cst_15 = arith.constant dense<0.000000e+00> : vector<8x128xf32>
    %21 = tpu.matmul %17, %1, %cst_15 {dimension_numbers = #tpu.dot_dimension_numbers<[1], [0], [0], [1], [0, 0, 1, 1], [], []>} : vector<8x32xf32>, vector<32x128xf32>, vector<8x128xf32> -> vector<8x128xf32>
    %22 = arith.addf %20, %21 : vector<8x128xf32>
    %23 = arith.negf %22 : vector<8x128xf32>
    %24 = math.exp %23 : vector<8x128xf32>
    %cst_16 = arith.constant 1.000000e+00 : f32
    %25 = vector.broadcast %cst_16 : f32 to vector<8x128xf32>
    %26 = arith.addf %25, %24 : vector<8x128xf32>
    %27 = arith.divf %25, %26 : vector<8x128xf32>
    %28 = vector.extract_strided_slice %27 {offsets = [0, 0], sizes = [8, 32], strides = [1, 1]} : vector<8x128xf32> to vector<8x32xf32>
    %29 = vector.extract_strided_slice %27 {offsets = [0, 32], sizes = [8, 32], strides = [1, 1]} : vector<8x128xf32> to vector<8x32xf32>
    %30 = vector.extract_strided_slice %27 {offsets = [0, 64], sizes = [8, 32], strides = [1, 1]} : vector<8x128xf32> to vector<8x32xf32>
    %cst_17 = arith.constant 2.000000e+00 : f32
    %31 = vector.broadcast %cst_17 : f32 to vector<8x32xf32>
    %32 = arith.mulf %31, %30 : vector<8x32xf32>
    %cst_18 = arith.constant 1.000000e+00 : f32
    %33 = vector.broadcast %cst_18 : f32 to vector<8x32xf32>
    %34 = arith.subf %32, %33 : vector<8x32xf32>
    %35 = vector.extract_strided_slice %27 {offsets = [0, 96], sizes = [8, 32], strides = [1, 1]} : vector<8x128xf32> to vector<8x32xf32>
    %36 = arith.mulf %29, %18 : vector<8x32xf32>
    %37 = arith.mulf %28, %34 : vector<8x32xf32>
    %38 = arith.addf %36, %37 : vector<8x32xf32>
    %39 = math.tanh %38 : vector<8x32xf32>
    %40 = arith.mulf %35, %39 : vector<8x32xf32>
    %cst_19 = arith.constant dense<0.000000e+00> : vector<8x128xf32>
    %41 = tpu.matmul %40, %2, %cst_19 {dimension_numbers = #tpu.dot_dimension_numbers<[1], [0], [0], [1], [0, 0, 1, 1], [], []>} : vector<8x32xf32>, vector<32x128xf32>, vector<8x128xf32> -> vector<8x128xf32>
    %42 = arith.addf %41, %16 : vector<8x128xf32>
    %43 = arith.negf %42 : vector<8x128xf32>
    %44 = math.exp %43 : vector<8x128xf32>
    %cst_20 = arith.constant 1.000000e+00 : f32
    %45 = vector.broadcast %cst_20 : f32 to vector<8x128xf32>
    %46 = arith.addf %45, %44 : vector<8x128xf32>
    %47 = arith.divf %45, %46 : vector<8x128xf32>
    %48 = vector.extract_strided_slice %47 {offsets = [0, 0], sizes = [8, 32], strides = [1, 1]} : vector<8x128xf32> to vector<8x32xf32>
    %49 = vector.extract_strided_slice %47 {offsets = [0, 32], sizes = [8, 32], strides = [1, 1]} : vector<8x128xf32> to vector<8x32xf32>
    %50 = vector.extract_strided_slice %47 {offsets = [0, 64], sizes = [8, 32], strides = [1, 1]} : vector<8x128xf32> to vector<8x32xf32>
    %cst_21 = arith.constant 2.000000e+00 : f32
    %51 = vector.broadcast %cst_21 : f32 to vector<8x32xf32>
    %52 = arith.mulf %51, %50 : vector<8x32xf32>
    %cst_22 = arith.constant 1.000000e+00 : f32
    %53 = vector.broadcast %cst_22 : f32 to vector<8x32xf32>
    %54 = arith.subf %52, %53 : vector<8x32xf32>
    %55 = vector.extract_strided_slice %47 {offsets = [0, 96], sizes = [8, 32], strides = [1, 1]} : vector<8x128xf32> to vector<8x32xf32>
    %56 = arith.mulf %49, %19 : vector<8x32xf32>
    %57 = arith.mulf %48, %54 : vector<8x32xf32>
    %58 = arith.addf %56, %57 : vector<8x32xf32>
    %59 = math.tanh %58 : vector<8x32xf32>
    %60 = arith.mulf %55, %59 : vector<8x32xf32>
    %cst_23 = arith.constant dense<0.000000e+00> : vector<8x128xf32>
    %61 = tpu.matmul %60, %3, %cst_23 {dimension_numbers = #tpu.dot_dimension_numbers<[1], [0], [0], [1], [0, 0, 1, 1], [], []>} : vector<8x32xf32>, vector<32x128xf32>, vector<8x128xf32> -> vector<8x128xf32>
    %62 = arith.addf %61, %16 : vector<8x128xf32>
    %63 = vector.extract_strided_slice %14 {offsets = [8, 0], sizes = [8, 128], strides = [1, 1]} : vector<64x128xf32> to vector<8x128xf32>
    %cst_24 = arith.constant dense<0.000000e+00> : vector<8x128xf32>
    %64 = tpu.matmul %40, %1, %cst_24 {dimension_numbers = #tpu.dot_dimension_numbers<[1], [0], [0], [1], [0, 0, 1, 1], [], []>} : vector<8x32xf32>, vector<32x128xf32>, vector<8x128xf32> -> vector<8x128xf32>
    %65 = arith.addf %63, %64 : vector<8x128xf32>
    %66 = arith.negf %65 : vector<8x128xf32>
    %67 = math.exp %66 : vector<8x128xf32>
    %cst_25 = arith.constant 1.000000e+00 : f32
    %68 = vector.broadcast %cst_25 : f32 to vector<8x128xf32>
    %69 = arith.addf %68, %67 : vector<8x128xf32>
    %70 = arith.divf %68, %69 : vector<8x128xf32>
    %71 = vector.extract_strided_slice %70 {offsets = [0, 0], sizes = [8, 32], strides = [1, 1]} : vector<8x128xf32> to vector<8x32xf32>
    %72 = vector.extract_strided_slice %70 {offsets = [0, 32], sizes = [8, 32], strides = [1, 1]} : vector<8x128xf32> to vector<8x32xf32>
    %73 = vector.extract_strided_slice %70 {offsets = [0, 64], sizes = [8, 32], strides = [1, 1]} : vector<8x128xf32> to vector<8x32xf32>
    %cst_26 = arith.constant 2.000000e+00 : f32
    %74 = vector.broadcast %cst_26 : f32 to vector<8x32xf32>
    %75 = arith.mulf %74, %73 : vector<8x32xf32>
    %cst_27 = arith.constant 1.000000e+00 : f32
    %76 = vector.broadcast %cst_27 : f32 to vector<8x32xf32>
    %77 = arith.subf %75, %76 : vector<8x32xf32>
    %78 = vector.extract_strided_slice %70 {offsets = [0, 96], sizes = [8, 32], strides = [1, 1]} : vector<8x128xf32> to vector<8x32xf32>
    %79 = arith.mulf %72, %38 : vector<8x32xf32>
    %80 = arith.mulf %71, %77 : vector<8x32xf32>
    %81 = arith.addf %79, %80 : vector<8x32xf32>
    %82 = math.tanh %81 : vector<8x32xf32>
    %83 = arith.mulf %78, %82 : vector<8x32xf32>
    %cst_28 = arith.constant dense<0.000000e+00> : vector<8x128xf32>
    %84 = tpu.matmul %83, %2, %cst_28 {dimension_numbers = #tpu.dot_dimension_numbers<[1], [0], [0], [1], [0, 0, 1, 1], [], []>} : vector<8x32xf32>, vector<32x128xf32>, vector<8x128xf32> -> vector<8x128xf32>
    %85 = arith.addf %84, %62 : vector<8x128xf32>
    %86 = arith.negf %85 : vector<8x128xf32>
    %87 = math.exp %86 : vector<8x128xf32>
    %cst_29 = arith.constant 1.000000e+00 : f32
    %88 = vector.broadcast %cst_29 : f32 to vector<8x128xf32>
    %89 = arith.addf %88, %87 : vector<8x128xf32>
    %90 = arith.divf %88, %89 : vector<8x128xf32>
    %91 = vector.extract_strided_slice %90 {offsets = [0, 0], sizes = [8, 32], strides = [1, 1]} : vector<8x128xf32> to vector<8x32xf32>
    %92 = vector.extract_strided_slice %90 {offsets = [0, 32], sizes = [8, 32], strides = [1, 1]} : vector<8x128xf32> to vector<8x32xf32>
    %93 = vector.extract_strided_slice %90 {offsets = [0, 64], sizes = [8, 32], strides = [1, 1]} : vector<8x128xf32> to vector<8x32xf32>
    %cst_30 = arith.constant 2.000000e+00 : f32
    %94 = vector.broadcast %cst_30 : f32 to vector<8x32xf32>
    %95 = arith.mulf %94, %93 : vector<8x32xf32>
    %cst_31 = arith.constant 1.000000e+00 : f32
    %96 = vector.broadcast %cst_31 : f32 to vector<8x32xf32>
    %97 = arith.subf %95, %96 : vector<8x32xf32>
    %98 = vector.extract_strided_slice %90 {offsets = [0, 96], sizes = [8, 32], strides = [1, 1]} : vector<8x128xf32> to vector<8x32xf32>
    %99 = arith.mulf %92, %58 : vector<8x32xf32>
    %100 = arith.mulf %91, %97 : vector<8x32xf32>
    %101 = arith.addf %99, %100 : vector<8x32xf32>
    %102 = math.tanh %101 : vector<8x32xf32>
    %103 = arith.mulf %98, %102 : vector<8x32xf32>
    %cst_32 = arith.constant dense<0.000000e+00> : vector<8x128xf32>
    %104 = tpu.matmul %103, %3, %cst_32 {dimension_numbers = #tpu.dot_dimension_numbers<[1], [0], [0], [1], [0, 0, 1, 1], [], []>} : vector<8x32xf32>, vector<32x128xf32>, vector<8x128xf32> -> vector<8x128xf32>
    %105 = arith.addf %104, %16 : vector<8x128xf32>
    %106 = vector.extract_strided_slice %14 {offsets = [16, 0], sizes = [8, 128], strides = [1, 1]} : vector<64x128xf32> to vector<8x128xf32>
    %cst_33 = arith.constant dense<0.000000e+00> : vector<8x128xf32>
    %107 = tpu.matmul %83, %1, %cst_33 {dimension_numbers = #tpu.dot_dimension_numbers<[1], [0], [0], [1], [0, 0, 1, 1], [], []>} : vector<8x32xf32>, vector<32x128xf32>, vector<8x128xf32> -> vector<8x128xf32>
    %108 = arith.addf %106, %107 : vector<8x128xf32>
    %109 = arith.negf %108 : vector<8x128xf32>
    %110 = math.exp %109 : vector<8x128xf32>
    %cst_34 = arith.constant 1.000000e+00 : f32
    %111 = vector.broadcast %cst_34 : f32 to vector<8x128xf32>
    %112 = arith.addf %111, %110 : vector<8x128xf32>
    %113 = arith.divf %111, %112 : vector<8x128xf32>
    %114 = vector.extract_strided_slice %113 {offsets = [0, 0], sizes = [8, 32], strides = [1, 1]} : vector<8x128xf32> to vector<8x32xf32>
    %115 = vector.extract_strided_slice %113 {offsets = [0, 32], sizes = [8, 32], strides = [1, 1]} : vector<8x128xf32> to vector<8x32xf32>
    %116 = vector.extract_strided_slice %113 {offsets = [0, 64], sizes = [8, 32], strides = [1, 1]} : vector<8x128xf32> to vector<8x32xf32>
    %cst_35 = arith.constant 2.000000e+00 : f32
    %117 = vector.broadcast %cst_35 : f32 to vector<8x32xf32>
    %118 = arith.mulf %117, %116 : vector<8x32xf32>
    %cst_36 = arith.constant 1.000000e+00 : f32
    %119 = vector.broadcast %cst_36 : f32 to vector<8x32xf32>
    %120 = arith.subf %118, %119 : vector<8x32xf32>
    %121 = vector.extract_strided_slice %113 {offsets = [0, 96], sizes = [8, 32], strides = [1, 1]} : vector<8x128xf32> to vector<8x32xf32>
    %122 = arith.mulf %115, %81 : vector<8x32xf32>
    %123 = arith.mulf %114, %120 : vector<8x32xf32>
    %124 = arith.addf %122, %123 : vector<8x32xf32>
    %125 = math.tanh %124 : vector<8x32xf32>
    %126 = arith.mulf %121, %125 : vector<8x32xf32>
    %cst_37 = arith.constant dense<0.000000e+00> : vector<8x128xf32>
    %127 = tpu.matmul %126, %2, %cst_37 {dimension_numbers = #tpu.dot_dimension_numbers<[1], [0], [0], [1], [0, 0, 1, 1], [], []>} : vector<8x32xf32>, vector<32x128xf32>, vector<8x128xf32> -> vector<8x128xf32>
    %128 = arith.addf %127, %105 : vector<8x128xf32>
    %129 = arith.negf %128 : vector<8x128xf32>
    %130 = math.exp %129 : vector<8x128xf32>
    %cst_38 = arith.constant 1.000000e+00 : f32
    %131 = vector.broadcast %cst_38 : f32 to vector<8x128xf32>
    %132 = arith.addf %131, %130 : vector<8x128xf32>
    %133 = arith.divf %131, %132 : vector<8x128xf32>
    %134 = vector.extract_strided_slice %133 {offsets = [0, 0], sizes = [8, 32], strides = [1, 1]} : vector<8x128xf32> to vector<8x32xf32>
    %135 = vector.extract_strided_slice %133 {offsets = [0, 32], sizes = [8, 32], strides = [1, 1]} : vector<8x128xf32> to vector<8x32xf32>
    %136 = vector.extract_strided_slice %133 {offsets = [0, 64], sizes = [8, 32], strides = [1, 1]} : vector<8x128xf32> to vector<8x32xf32>
    %cst_39 = arith.constant 2.000000e+00 : f32
    %137 = vector.broadcast %cst_39 : f32 to vector<8x32xf32>
    %138 = arith.mulf %137, %136 : vector<8x32xf32>
    %cst_40 = arith.constant 1.000000e+00 : f32
    %139 = vector.broadcast %cst_40 : f32 to vector<8x32xf32>
    %140 = arith.subf %138, %139 : vector<8x32xf32>
    %141 = vector.extract_strided_slice %133 {offsets = [0, 96], sizes = [8, 32], strides = [1, 1]} : vector<8x128xf32> to vector<8x32xf32>
    %142 = arith.mulf %135, %101 : vector<8x32xf32>
    %143 = arith.mulf %134, %140 : vector<8x32xf32>
    %144 = arith.addf %142, %143 : vector<8x32xf32>
    %145 = math.tanh %144 : vector<8x32xf32>
    %146 = arith.mulf %141, %145 : vector<8x32xf32>
    %cst_41 = arith.constant dense<0.000000e+00> : vector<8x128xf32>
    %147 = tpu.matmul %146, %3, %cst_41 {dimension_numbers = #tpu.dot_dimension_numbers<[1], [0], [0], [1], [0, 0, 1, 1], [], []>} : vector<8x32xf32>, vector<32x128xf32>, vector<8x128xf32> -> vector<8x128xf32>
    %148 = arith.addf %147, %16 : vector<8x128xf32>
    %149 = vector.extract_strided_slice %14 {offsets = [24, 0], sizes = [8, 128], strides = [1, 1]} : vector<64x128xf32> to vector<8x128xf32>
    %cst_42 = arith.constant dense<0.000000e+00> : vector<8x128xf32>
    %150 = tpu.matmul %126, %1, %cst_42 {dimension_numbers = #tpu.dot_dimension_numbers<[1], [0], [0], [1], [0, 0, 1, 1], [], []>} : vector<8x32xf32>, vector<32x128xf32>, vector<8x128xf32> -> vector<8x128xf32>
    %151 = arith.addf %149, %150 : vector<8x128xf32>
    %152 = arith.negf %151 : vector<8x128xf32>
    %153 = math.exp %152 : vector<8x128xf32>
    %cst_43 = arith.constant 1.000000e+00 : f32
    %154 = vector.broadcast %cst_43 : f32 to vector<8x128xf32>
    %155 = arith.addf %154, %153 : vector<8x128xf32>
    %156 = arith.divf %154, %155 : vector<8x128xf32>
    %157 = vector.extract_strided_slice %156 {offsets = [0, 0], sizes = [8, 32], strides = [1, 1]} : vector<8x128xf32> to vector<8x32xf32>
    %158 = vector.extract_strided_slice %156 {offsets = [0, 32], sizes = [8, 32], strides = [1, 1]} : vector<8x128xf32> to vector<8x32xf32>
    %159 = vector.extract_strided_slice %156 {offsets = [0, 64], sizes = [8, 32], strides = [1, 1]} : vector<8x128xf32> to vector<8x32xf32>
    %cst_44 = arith.constant 2.000000e+00 : f32
    %160 = vector.broadcast %cst_44 : f32 to vector<8x32xf32>
    %161 = arith.mulf %160, %159 : vector<8x32xf32>
    %cst_45 = arith.constant 1.000000e+00 : f32
    %162 = vector.broadcast %cst_45 : f32 to vector<8x32xf32>
    %163 = arith.subf %161, %162 : vector<8x32xf32>
    %164 = vector.extract_strided_slice %156 {offsets = [0, 96], sizes = [8, 32], strides = [1, 1]} : vector<8x128xf32> to vector<8x32xf32>
    %165 = arith.mulf %158, %124 : vector<8x32xf32>
    %166 = arith.mulf %157, %163 : vector<8x32xf32>
    %167 = arith.addf %165, %166 : vector<8x32xf32>
    %168 = math.tanh %167 : vector<8x32xf32>
    %169 = arith.mulf %164, %168 : vector<8x32xf32>
    %cst_46 = arith.constant dense<0.000000e+00> : vector<8x128xf32>
    %170 = tpu.matmul %169, %2, %cst_46 {dimension_numbers = #tpu.dot_dimension_numbers<[1], [0], [0], [1], [0, 0, 1, 1], [], []>} : vector<8x32xf32>, vector<32x128xf32>, vector<8x128xf32> -> vector<8x128xf32>
    %171 = arith.addf %170, %148 : vector<8x128xf32>
    %172 = arith.negf %171 : vector<8x128xf32>
    %173 = math.exp %172 : vector<8x128xf32>
    %cst_47 = arith.constant 1.000000e+00 : f32
    %174 = vector.broadcast %cst_47 : f32 to vector<8x128xf32>
    %175 = arith.addf %174, %173 : vector<8x128xf32>
    %176 = arith.divf %174, %175 : vector<8x128xf32>
    %177 = vector.extract_strided_slice %176 {offsets = [0, 0], sizes = [8, 32], strides = [1, 1]} : vector<8x128xf32> to vector<8x32xf32>
    %178 = vector.extract_strided_slice %176 {offsets = [0, 32], sizes = [8, 32], strides = [1, 1]} : vector<8x128xf32> to vector<8x32xf32>
    %179 = vector.extract_strided_slice %176 {offsets = [0, 64], sizes = [8, 32], strides = [1, 1]} : vector<8x128xf32> to vector<8x32xf32>
    %cst_48 = arith.constant 2.000000e+00 : f32
    %180 = vector.broadcast %cst_48 : f32 to vector<8x32xf32>
    %181 = arith.mulf %180, %179 : vector<8x32xf32>
    %cst_49 = arith.constant 1.000000e+00 : f32
    %182 = vector.broadcast %cst_49 : f32 to vector<8x32xf32>
    %183 = arith.subf %181, %182 : vector<8x32xf32>
    %184 = vector.extract_strided_slice %176 {offsets = [0, 96], sizes = [8, 32], strides = [1, 1]} : vector<8x128xf32> to vector<8x32xf32>
    %185 = arith.mulf %178, %144 : vector<8x32xf32>
    %186 = arith.mulf %177, %183 : vector<8x32xf32>
    %187 = arith.addf %185, %186 : vector<8x32xf32>
    %188 = math.tanh %187 : vector<8x32xf32>
    %189 = arith.mulf %184, %188 : vector<8x32xf32>
    %cst_50 = arith.constant dense<0.000000e+00> : vector<8x128xf32>
    %190 = tpu.matmul %189, %3, %cst_50 {dimension_numbers = #tpu.dot_dimension_numbers<[1], [0], [0], [1], [0, 0, 1, 1], [], []>} : vector<8x32xf32>, vector<32x128xf32>, vector<8x128xf32> -> vector<8x128xf32>
    %191 = arith.addf %190, %16 : vector<8x128xf32>
    %192 = vector.extract_strided_slice %14 {offsets = [32, 0], sizes = [8, 128], strides = [1, 1]} : vector<64x128xf32> to vector<8x128xf32>
    %cst_51 = arith.constant dense<0.000000e+00> : vector<8x128xf32>
    %193 = tpu.matmul %169, %1, %cst_51 {dimension_numbers = #tpu.dot_dimension_numbers<[1], [0], [0], [1], [0, 0, 1, 1], [], []>} : vector<8x32xf32>, vector<32x128xf32>, vector<8x128xf32> -> vector<8x128xf32>
    %194 = arith.addf %192, %193 : vector<8x128xf32>
    %195 = arith.negf %194 : vector<8x128xf32>
    %196 = math.exp %195 : vector<8x128xf32>
    %cst_52 = arith.constant 1.000000e+00 : f32
    %197 = vector.broadcast %cst_52 : f32 to vector<8x128xf32>
    %198 = arith.addf %197, %196 : vector<8x128xf32>
    %199 = arith.divf %197, %198 : vector<8x128xf32>
    %200 = vector.extract_strided_slice %199 {offsets = [0, 0], sizes = [8, 32], strides = [1, 1]} : vector<8x128xf32> to vector<8x32xf32>
    %201 = vector.extract_strided_slice %199 {offsets = [0, 32], sizes = [8, 32], strides = [1, 1]} : vector<8x128xf32> to vector<8x32xf32>
    %202 = vector.extract_strided_slice %199 {offsets = [0, 64], sizes = [8, 32], strides = [1, 1]} : vector<8x128xf32> to vector<8x32xf32>
    %cst_53 = arith.constant 2.000000e+00 : f32
    %203 = vector.broadcast %cst_53 : f32 to vector<8x32xf32>
    %204 = arith.mulf %203, %202 : vector<8x32xf32>
    %cst_54 = arith.constant 1.000000e+00 : f32
    %205 = vector.broadcast %cst_54 : f32 to vector<8x32xf32>
    %206 = arith.subf %204, %205 : vector<8x32xf32>
    %207 = vector.extract_strided_slice %199 {offsets = [0, 96], sizes = [8, 32], strides = [1, 1]} : vector<8x128xf32> to vector<8x32xf32>
    %208 = arith.mulf %201, %167 : vector<8x32xf32>
    %209 = arith.mulf %200, %206 : vector<8x32xf32>
    %210 = arith.addf %208, %209 : vector<8x32xf32>
    %211 = math.tanh %210 : vector<8x32xf32>
    %212 = arith.mulf %207, %211 : vector<8x32xf32>
    %cst_55 = arith.constant dense<0.000000e+00> : vector<8x128xf32>
    %213 = tpu.matmul %212, %2, %cst_55 {dimension_numbers = #tpu.dot_dimension_numbers<[1], [0], [0], [1], [0, 0, 1, 1], [], []>} : vector<8x32xf32>, vector<32x128xf32>, vector<8x128xf32> -> vector<8x128xf32>
    %214 = arith.addf %213, %191 : vector<8x128xf32>
    %215 = arith.negf %214 : vector<8x128xf32>
    %216 = math.exp %215 : vector<8x128xf32>
    %cst_56 = arith.constant 1.000000e+00 : f32
    %217 = vector.broadcast %cst_56 : f32 to vector<8x128xf32>
    %218 = arith.addf %217, %216 : vector<8x128xf32>
    %219 = arith.divf %217, %218 : vector<8x128xf32>
    %220 = vector.extract_strided_slice %219 {offsets = [0, 0], sizes = [8, 32], strides = [1, 1]} : vector<8x128xf32> to vector<8x32xf32>
    %221 = vector.extract_strided_slice %219 {offsets = [0, 32], sizes = [8, 32], strides = [1, 1]} : vector<8x128xf32> to vector<8x32xf32>
    %222 = vector.extract_strided_slice %219 {offsets = [0, 64], sizes = [8, 32], strides = [1, 1]} : vector<8x128xf32> to vector<8x32xf32>
    %cst_57 = arith.constant 2.000000e+00 : f32
    %223 = vector.broadcast %cst_57 : f32 to vector<8x32xf32>
    %224 = arith.mulf %223, %222 : vector<8x32xf32>
    %cst_58 = arith.constant 1.000000e+00 : f32
    %225 = vector.broadcast %cst_58 : f32 to vector<8x32xf32>
    %226 = arith.subf %224, %225 : vector<8x32xf32>
    %227 = vector.extract_strided_slice %219 {offsets = [0, 96], sizes = [8, 32], strides = [1, 1]} : vector<8x128xf32> to vector<8x32xf32>
    %228 = arith.mulf %221, %187 : vector<8x32xf32>
    %229 = arith.mulf %220, %226 : vector<8x32xf32>
    %230 = arith.addf %228, %229 : vector<8x32xf32>
    %231 = math.tanh %230 : vector<8x32xf32>
    %232 = arith.mulf %227, %231 : vector<8x32xf32>
    %cst_59 = arith.constant dense<0.000000e+00> : vector<8x128xf32>
    %233 = tpu.matmul %232, %3, %cst_59 {dimension_numbers = #tpu.dot_dimension_numbers<[1], [0], [0], [1], [0, 0, 1, 1], [], []>} : vector<8x32xf32>, vector<32x128xf32>, vector<8x128xf32> -> vector<8x128xf32>
    %234 = arith.addf %233, %16 : vector<8x128xf32>
    %235 = vector.extract_strided_slice %14 {offsets = [40, 0], sizes = [8, 128], strides = [1, 1]} : vector<64x128xf32> to vector<8x128xf32>
    %cst_60 = arith.constant dense<0.000000e+00> : vector<8x128xf32>
    %236 = tpu.matmul %212, %1, %cst_60 {dimension_numbers = #tpu.dot_dimension_numbers<[1], [0], [0], [1], [0, 0, 1, 1], [], []>} : vector<8x32xf32>, vector<32x128xf32>, vector<8x128xf32> -> vector<8x128xf32>
    %237 = arith.addf %235, %236 : vector<8x128xf32>
    %238 = arith.negf %237 : vector<8x128xf32>
    %239 = math.exp %238 : vector<8x128xf32>
    %cst_61 = arith.constant 1.000000e+00 : f32
    %240 = vector.broadcast %cst_61 : f32 to vector<8x128xf32>
    %241 = arith.addf %240, %239 : vector<8x128xf32>
    %242 = arith.divf %240, %241 : vector<8x128xf32>
    %243 = vector.extract_strided_slice %242 {offsets = [0, 0], sizes = [8, 32], strides = [1, 1]} : vector<8x128xf32> to vector<8x32xf32>
    %244 = vector.extract_strided_slice %242 {offsets = [0, 32], sizes = [8, 32], strides = [1, 1]} : vector<8x128xf32> to vector<8x32xf32>
    %245 = vector.extract_strided_slice %242 {offsets = [0, 64], sizes = [8, 32], strides = [1, 1]} : vector<8x128xf32> to vector<8x32xf32>
    %cst_62 = arith.constant 2.000000e+00 : f32
    %246 = vector.broadcast %cst_62 : f32 to vector<8x32xf32>
    %247 = arith.mulf %246, %245 : vector<8x32xf32>
    %cst_63 = arith.constant 1.000000e+00 : f32
    %248 = vector.broadcast %cst_63 : f32 to vector<8x32xf32>
    %249 = arith.subf %247, %248 : vector<8x32xf32>
    %250 = vector.extract_strided_slice %242 {offsets = [0, 96], sizes = [8, 32], strides = [1, 1]} : vector<8x128xf32> to vector<8x32xf32>
    %251 = arith.mulf %244, %210 : vector<8x32xf32>
    %252 = arith.mulf %243, %249 : vector<8x32xf32>
    %253 = arith.addf %251, %252 : vector<8x32xf32>
    %254 = math.tanh %253 : vector<8x32xf32>
    %255 = arith.mulf %250, %254 : vector<8x32xf32>
    %cst_64 = arith.constant dense<0.000000e+00> : vector<8x128xf32>
    %256 = tpu.matmul %255, %2, %cst_64 {dimension_numbers = #tpu.dot_dimension_numbers<[1], [0], [0], [1], [0, 0, 1, 1], [], []>} : vector<8x32xf32>, vector<32x128xf32>, vector<8x128xf32> -> vector<8x128xf32>
    %257 = arith.addf %256, %234 : vector<8x128xf32>
    %258 = arith.negf %257 : vector<8x128xf32>
    %259 = math.exp %258 : vector<8x128xf32>
    %cst_65 = arith.constant 1.000000e+00 : f32
    %260 = vector.broadcast %cst_65 : f32 to vector<8x128xf32>
    %261 = arith.addf %260, %259 : vector<8x128xf32>
    %262 = arith.divf %260, %261 : vector<8x128xf32>
    %263 = vector.extract_strided_slice %262 {offsets = [0, 0], sizes = [8, 32], strides = [1, 1]} : vector<8x128xf32> to vector<8x32xf32>
    %264 = vector.extract_strided_slice %262 {offsets = [0, 32], sizes = [8, 32], strides = [1, 1]} : vector<8x128xf32> to vector<8x32xf32>
    %265 = vector.extract_strided_slice %262 {offsets = [0, 64], sizes = [8, 32], strides = [1, 1]} : vector<8x128xf32> to vector<8x32xf32>
    %cst_66 = arith.constant 2.000000e+00 : f32
    %266 = vector.broadcast %cst_66 : f32 to vector<8x32xf32>
    %267 = arith.mulf %266, %265 : vector<8x32xf32>
    %cst_67 = arith.constant 1.000000e+00 : f32
    %268 = vector.broadcast %cst_67 : f32 to vector<8x32xf32>
    %269 = arith.subf %267, %268 : vector<8x32xf32>
    %270 = vector.extract_strided_slice %262 {offsets = [0, 96], sizes = [8, 32], strides = [1, 1]} : vector<8x128xf32> to vector<8x32xf32>
    %271 = arith.mulf %264, %230 : vector<8x32xf32>
    %272 = arith.mulf %263, %269 : vector<8x32xf32>
    %273 = arith.addf %271, %272 : vector<8x32xf32>
    %274 = math.tanh %273 : vector<8x32xf32>
    %275 = arith.mulf %270, %274 : vector<8x32xf32>
    %cst_68 = arith.constant dense<0.000000e+00> : vector<8x128xf32>
    %276 = tpu.matmul %275, %3, %cst_68 {dimension_numbers = #tpu.dot_dimension_numbers<[1], [0], [0], [1], [0, 0, 1, 1], [], []>} : vector<8x32xf32>, vector<32x128xf32>, vector<8x128xf32> -> vector<8x128xf32>
    %277 = arith.addf %276, %16 : vector<8x128xf32>
    %278 = vector.extract_strided_slice %14 {offsets = [48, 0], sizes = [8, 128], strides = [1, 1]} : vector<64x128xf32> to vector<8x128xf32>
    %cst_69 = arith.constant dense<0.000000e+00> : vector<8x128xf32>
    %279 = tpu.matmul %255, %1, %cst_69 {dimension_numbers = #tpu.dot_dimension_numbers<[1], [0], [0], [1], [0, 0, 1, 1], [], []>} : vector<8x32xf32>, vector<32x128xf32>, vector<8x128xf32> -> vector<8x128xf32>
    %280 = arith.addf %278, %279 : vector<8x128xf32>
    %281 = arith.negf %280 : vector<8x128xf32>
    %282 = math.exp %281 : vector<8x128xf32>
    %cst_70 = arith.constant 1.000000e+00 : f32
    %283 = vector.broadcast %cst_70 : f32 to vector<8x128xf32>
    %284 = arith.addf %283, %282 : vector<8x128xf32>
    %285 = arith.divf %283, %284 : vector<8x128xf32>
    %286 = vector.extract_strided_slice %285 {offsets = [0, 0], sizes = [8, 32], strides = [1, 1]} : vector<8x128xf32> to vector<8x32xf32>
    %287 = vector.extract_strided_slice %285 {offsets = [0, 32], sizes = [8, 32], strides = [1, 1]} : vector<8x128xf32> to vector<8x32xf32>
    %288 = vector.extract_strided_slice %285 {offsets = [0, 64], sizes = [8, 32], strides = [1, 1]} : vector<8x128xf32> to vector<8x32xf32>
    %cst_71 = arith.constant 2.000000e+00 : f32
    %289 = vector.broadcast %cst_71 : f32 to vector<8x32xf32>
    %290 = arith.mulf %289, %288 : vector<8x32xf32>
    %cst_72 = arith.constant 1.000000e+00 : f32
    %291 = vector.broadcast %cst_72 : f32 to vector<8x32xf32>
    %292 = arith.subf %290, %291 : vector<8x32xf32>
    %293 = vector.extract_strided_slice %285 {offsets = [0, 96], sizes = [8, 32], strides = [1, 1]} : vector<8x128xf32> to vector<8x32xf32>
    %294 = arith.mulf %287, %253 : vector<8x32xf32>
    %295 = arith.mulf %286, %292 : vector<8x32xf32>
    %296 = arith.addf %294, %295 : vector<8x32xf32>
    %297 = math.tanh %296 : vector<8x32xf32>
    %298 = arith.mulf %293, %297 : vector<8x32xf32>
    %cst_73 = arith.constant dense<0.000000e+00> : vector<8x128xf32>
    %299 = tpu.matmul %298, %2, %cst_73 {dimension_numbers = #tpu.dot_dimension_numbers<[1], [0], [0], [1], [0, 0, 1, 1], [], []>} : vector<8x32xf32>, vector<32x128xf32>, vector<8x128xf32> -> vector<8x128xf32>
    %300 = arith.addf %299, %277 : vector<8x128xf32>
    %301 = arith.negf %300 : vector<8x128xf32>
    %302 = math.exp %301 : vector<8x128xf32>
    %cst_74 = arith.constant 1.000000e+00 : f32
    %303 = vector.broadcast %cst_74 : f32 to vector<8x128xf32>
    %304 = arith.addf %303, %302 : vector<8x128xf32>
    %305 = arith.divf %303, %304 : vector<8x128xf32>
    %306 = vector.extract_strided_slice %305 {offsets = [0, 0], sizes = [8, 32], strides = [1, 1]} : vector<8x128xf32> to vector<8x32xf32>
    %307 = vector.extract_strided_slice %305 {offsets = [0, 32], sizes = [8, 32], strides = [1, 1]} : vector<8x128xf32> to vector<8x32xf32>
    %308 = vector.extract_strided_slice %305 {offsets = [0, 64], sizes = [8, 32], strides = [1, 1]} : vector<8x128xf32> to vector<8x32xf32>
    %cst_75 = arith.constant 2.000000e+00 : f32
    %309 = vector.broadcast %cst_75 : f32 to vector<8x32xf32>
    %310 = arith.mulf %309, %308 : vector<8x32xf32>
    %cst_76 = arith.constant 1.000000e+00 : f32
    %311 = vector.broadcast %cst_76 : f32 to vector<8x32xf32>
    %312 = arith.subf %310, %311 : vector<8x32xf32>
    %313 = vector.extract_strided_slice %305 {offsets = [0, 96], sizes = [8, 32], strides = [1, 1]} : vector<8x128xf32> to vector<8x32xf32>
    %314 = arith.mulf %307, %273 : vector<8x32xf32>
    %315 = arith.mulf %306, %312 : vector<8x32xf32>
    %316 = arith.addf %314, %315 : vector<8x32xf32>
    %317 = math.tanh %316 : vector<8x32xf32>
    %318 = arith.mulf %313, %317 : vector<8x32xf32>
    %cst_77 = arith.constant dense<0.000000e+00> : vector<8x128xf32>
    %319 = tpu.matmul %318, %3, %cst_77 {dimension_numbers = #tpu.dot_dimension_numbers<[1], [0], [0], [1], [0, 0, 1, 1], [], []>} : vector<8x32xf32>, vector<32x128xf32>, vector<8x128xf32> -> vector<8x128xf32>
    %320 = arith.addf %319, %16 : vector<8x128xf32>
    %321 = vector.extract_strided_slice %14 {offsets = [56, 0], sizes = [8, 128], strides = [1, 1]} : vector<64x128xf32> to vector<8x128xf32>
    %cst_78 = arith.constant dense<0.000000e+00> : vector<8x128xf32>
    %322 = tpu.matmul %298, %1, %cst_78 {dimension_numbers = #tpu.dot_dimension_numbers<[1], [0], [0], [1], [0, 0, 1, 1], [], []>} : vector<8x32xf32>, vector<32x128xf32>, vector<8x128xf32> -> vector<8x128xf32>
    %323 = arith.addf %321, %322 : vector<8x128xf32>
    %324 = arith.negf %323 : vector<8x128xf32>
    %325 = math.exp %324 : vector<8x128xf32>
    %cst_79 = arith.constant 1.000000e+00 : f32
    %326 = vector.broadcast %cst_79 : f32 to vector<8x128xf32>
    %327 = arith.addf %326, %325 : vector<8x128xf32>
    %328 = arith.divf %326, %327 : vector<8x128xf32>
    %329 = vector.extract_strided_slice %328 {offsets = [0, 0], sizes = [8, 32], strides = [1, 1]} : vector<8x128xf32> to vector<8x32xf32>
    %330 = vector.extract_strided_slice %328 {offsets = [0, 32], sizes = [8, 32], strides = [1, 1]} : vector<8x128xf32> to vector<8x32xf32>
    %331 = vector.extract_strided_slice %328 {offsets = [0, 64], sizes = [8, 32], strides = [1, 1]} : vector<8x128xf32> to vector<8x32xf32>
    %cst_80 = arith.constant 2.000000e+00 : f32
    %332 = vector.broadcast %cst_80 : f32 to vector<8x32xf32>
    %333 = arith.mulf %332, %331 : vector<8x32xf32>
    %cst_81 = arith.constant 1.000000e+00 : f32
    %334 = vector.broadcast %cst_81 : f32 to vector<8x32xf32>
    %335 = arith.subf %333, %334 : vector<8x32xf32>
    %336 = vector.extract_strided_slice %328 {offsets = [0, 96], sizes = [8, 32], strides = [1, 1]} : vector<8x128xf32> to vector<8x32xf32>
    %337 = arith.mulf %330, %296 : vector<8x32xf32>
    %338 = arith.mulf %329, %335 : vector<8x32xf32>
    %339 = arith.addf %337, %338 : vector<8x32xf32>
    %340 = math.tanh %339 : vector<8x32xf32>
    %341 = arith.mulf %336, %340 : vector<8x32xf32>
    %cst_82 = arith.constant dense<0.000000e+00> : vector<8x128xf32>
    %342 = tpu.matmul %341, %2, %cst_82 {dimension_numbers = #tpu.dot_dimension_numbers<[1], [0], [0], [1], [0, 0, 1, 1], [], []>} : vector<8x32xf32>, vector<32x128xf32>, vector<8x128xf32> -> vector<8x128xf32>
    %343 = arith.addf %342, %320 : vector<8x128xf32>
    %344 = arith.negf %343 : vector<8x128xf32>
    %345 = math.exp %344 : vector<8x128xf32>
    %cst_83 = arith.constant 1.000000e+00 : f32
    %346 = vector.broadcast %cst_83 : f32 to vector<8x128xf32>
    %347 = arith.addf %346, %345 : vector<8x128xf32>
    %348 = arith.divf %346, %347 : vector<8x128xf32>
    %349 = vector.extract_strided_slice %348 {offsets = [0, 0], sizes = [8, 32], strides = [1, 1]} : vector<8x128xf32> to vector<8x32xf32>
    %350 = vector.extract_strided_slice %348 {offsets = [0, 32], sizes = [8, 32], strides = [1, 1]} : vector<8x128xf32> to vector<8x32xf32>
    %351 = vector.extract_strided_slice %348 {offsets = [0, 64], sizes = [8, 32], strides = [1, 1]} : vector<8x128xf32> to vector<8x32xf32>
    %cst_84 = arith.constant 2.000000e+00 : f32
    %352 = vector.broadcast %cst_84 : f32 to vector<8x32xf32>
    %353 = arith.mulf %352, %351 : vector<8x32xf32>
    %cst_85 = arith.constant 1.000000e+00 : f32
    %354 = vector.broadcast %cst_85 : f32 to vector<8x32xf32>
    %355 = arith.subf %353, %354 : vector<8x32xf32>
    %356 = vector.extract_strided_slice %348 {offsets = [0, 96], sizes = [8, 32], strides = [1, 1]} : vector<8x128xf32> to vector<8x32xf32>
    %357 = arith.mulf %350, %316 : vector<8x32xf32>
    %358 = arith.mulf %349, %355 : vector<8x32xf32>
    %359 = arith.addf %357, %358 : vector<8x32xf32>
    %360 = math.tanh %359 : vector<8x32xf32>
    %361 = arith.mulf %356, %360 : vector<8x32xf32>
    %cst_86 = arith.constant dense<0.000000e+00> : vector<8x128xf32>
    %362 = tpu.matmul %361, %6, %cst_86 {dimension_numbers = #tpu.dot_dimension_numbers<[1], [0], [0], [1], [0, 0, 1, 1], [], []>} : vector<8x32xf32>, vector<32x128xf32>, vector<8x128xf32> -> vector<8x128xf32>
    %363 = vector.shape_cast %7 : vector<1x128xf32> to vector<1x128xf32>
    %364 = vector.broadcast %363 : vector<1x128xf32> to vector<8x128xf32>
    %365 = arith.addf %362, %364 : vector<8x128xf32>
    %cst_87 = arith.constant 0.000000e+00 : f32
    %366 = vector.broadcast %cst_87 : f32 to vector<8x128xf32>
    %367 = arith.maximumf %365, %366 : vector<8x128xf32>
    %368 = vector.extract_strided_slice %367 {offsets = [0, 0], sizes = [8, 32], strides = [1, 1]} : vector<8x128xf32> to vector<8x32xf32>
    %cst_88 = arith.constant dense<0.000000e+00> : vector<8x128xf32>
    %369 = tpu.matmul %368, %8, %cst_88 {dimension_numbers = #tpu.dot_dimension_numbers<[1], [0], [0], [1], [0, 0, 1, 1], [], []>} : vector<8x32xf32>, vector<32x128xf32>, vector<8x128xf32> -> vector<8x128xf32>
    %370 = vector.broadcast %9 : vector<1x128xf32> to vector<8x128xf32>
    %371 = arith.addf %369, %370 : vector<8x128xf32>
    %372 = vector.extract_strided_slice %371 {offsets = [0, 0], sizes = [8, 1], strides = [1, 1]} : vector<8x128xf32> to vector<8x1xf32>
    %c0_89 = arith.constant 0 : index
    %c0_90 = arith.constant 0 : index
    %373 = vector.load %arg2[%c0_89, %c0_90] : memref<8x1xf32, #tpu.memory_space<vmem>>, vector<8x1xf32>
    tpu.vector_store %arg2[%c0_89, %c0_90], %372 {strides = array<i32>} : memref<8x1xf32, #tpu.memory_space<vmem>>, vector<8x1xf32>,
    return
  }
}

</mosaic_0001>

<bundles_post_ra>
// kernel: student_count_predictor_forward.1
= control target key start
LH: loop header
LB: loop body
LE: loop exit
PB: predicated region body
PF: predicated region fallthrough
CT: control target
= control target key end

     0   :  { %vm45_vm0 = vcmask 64512   ;;  %v1493_v6 = vmov 0.0   ;;  %s1494_s23 = smov 64   ;;  %s1495_s24 = smov 32   ;;  %vm112_vm5 = vcmask 261120   ;;  %s1903_s1 = inlined_call_operand.vmem [shape: f32[200,128], index: 1, kind: input, shape index: {}]   ;;  %s1904_s0 = inlined_call_operand.vmem [shape: f32[64,8], index: 0, kind: input, shape index: {}]   ;;  %s1905_s2 = inlined_call_operand.vmem [shape: f32[8,1], index: 2, kind: output, shape index: {}]  }
   0x1   :  { %v1514_v0 = vld [vmem:[%s1903_s1 + $0x20] sm:$0xff]  ;;  %v1519_v1 = vld [vmem:[%s1903_s1 + $0x18] sm:$0xff]  ;;  %v1531_v4 = vld [vmem:[%s1903_s1 + $0x10] sm:$0xff] }
   0x2   :  { %v11_v2 = vld [vmem:[%s1903_s1] sm:$0xff]  ;;  %128 = vmatpush.msra.mxu1 %v1514_v0  ;;  %v1538_v5 = vld [vmem:[%s1903_s1 + $0x8] sm:$0xff]  ;;  %v1570_v34 = vld [vmem:[%s1903_s1 + $0x38] sm:$0xff] }
   0x3   :  { %85 = vmatpush.msra.mxu0 %v11_v2  ;;  %v36_v3 = vld [vmem:[%s1904_s0] sm:$0xff]  ;;  %v1553_v7 = vld [vmem:[%s1903_s1 + $0x68] ss:$0 sm:$0xff]  ;;  %v1579_v36 = vld [vmem:[%s1903_s1 + $0x30] sm:$0xff] }
   0x4   :  { %1324 = vmatmul.msk.f32.vlgmr.msra.gmra.mxu0 %vm45_vm0, %v36_v3  ;;  %129 = vmatpush.msra.mxu1 %v1519_v1  ;;  %v1565_v33 = vld [vmem:[%s1903_s1 + $0x40] sm:$0xff]  ;;  %v37_v35 = vld [vmem:[%s1904_s0 + $0x8] sm:$0xff]  ;;  %v1609_v46 = vld [vmem:[%s1903_s1 + $0x70] ss:$0 sm:$0xff] }
   0x5   :  { %192 = vmatpush.msra.mxu2 %v1565_v33  ;;  %v1586_v37 = vld [vmem:[%s1903_s1 + $0x28] sm:$0xff] }
   0x6   :  { %130 = vmatpush.msra.mxu1 %v1531_v4 }
   0x7   :  { %193 = vmatpush.msra.mxu2 %v1570_v34 }
   0x8   :  { %131 = vmatpush.msra.mxu1 %v1538_v5 }
   0x9   :  { %132 = vmatmul.f32.vlgmr.msra.gmra.mxu1 %v1493_v6  ;;  %194 = vmatpush.msra.mxu2 %v1579_v36 }
   0xa   :  { %275 = vmatpush.msrb.mxu1 %v1514_v0 }
   0xb   :  { %195 = vmatpush.msra.mxu2 %v1586_v37 }
   0xc   :  { %276 = vmatpush.msrb.mxu1 %v1519_v1  ;;  %1325 = vmatmul.msk.f32.gmra.mxu0 %vm45_vm0, %v37_v35 }
   0xd   :  { %339 = vmatpush.msrb.mxu2 %v1565_v33 }
   0xe   :  { %277 = vmatpush.msrb.mxu1 %v1531_v4 }
   0xf   :  { %340 = vmatpush.msrb.mxu2 %v1570_v34 }
  0x10   :  { %278 = vmatpush.msrb.mxu1 %v1538_v5 }
  0x11   :  { %341 = vmatpush.msrb.mxu2 %v1579_v36 }
  0x12   :  { %422 = vmatpush.msra.mxu1 %v1514_v0 }
  0x13   :  { %342 = vmatpush.msrb.mxu2 %v1586_v37 }
  0x14   :  { %423 = vmatpush.msra.mxu1 %v1519_v1 }
  0x16   :  { %424 = vmatpush.msra.mxu1 %v1531_v4 }
  0x18   :  { %425 = vmatpush.msra.mxu1 %v1538_v5 }
  0x81   :  { %v87_v8 = vpop.f32.mrf.mxu0 }
  0x82   :  { %v88_v9 = vadd.f32 %v1553_v7, %v87_v8 }
  0x86   :  { %v133_v10 = vpop.f32.mrf.mxu1 }
  0x87   :  { %v136_v11 = vadd.f32 %v133_v10, %v88_v9 }
  0x89   :  { %v1332_v12 = vmul.f32 -1.442695, %v136_v11  ;;  %v90_v41 = vpop.f32.mrf.mxu0 }
  0x8a   :  { %v91_v42 = vadd.f32 %v1553_v7, %v90_v41 }
  0x8b   :  { %1395 = vpow2.f32 %v1332_v12 }
  0x91   :  { %v1396_v13 = vpop.eup %1395 }
  0x92   :  { %v140_v14 = vadd.f32 1.0, %v1396_v13 }
  0x94   :  { %1397 = vrcp.f32 %v140_v14  ;;  %v152_v18 = vand.u32 2147483648, %v140_v14  ;;  %v150_v20 = vand.u32 2147483647, %v140_v14  ;;  %vm146_vm2 = vweird.f32 %v140_v14 }
  0x96   :  { %v153_v22 = vor.u32 1.1754944e-38, %v152_v18  ;;  %vm151_vm4 = vcmp.eq.f32.partialorder %v150_v20, 8.507059e+37 }
  0x9a   :  { %v1398_v15 = vpop.eup %1397 }
  0x9b   :  { %v142_v16 = vmul.f32 %v1398_v15, %v140_v14  ;;  %vm147_vm1 = vweird.f32 %v1398_v15 }
  0x9c   :  { %vm148_vm3 = vmor %vm146_vm2, %vm147_vm1 }
  0x9d   :  { %v143_v17 = vsub.f32 1.0, %v142_v16 }
  0x9f   :  { %v144_v19 = vmul.f32 %v1398_v15, %v143_v17 }
  0xa1   :  { %v145_v21 = vadd.f32 %v1398_v15, %v144_v19 }
  0xa3   :  { %v149_v23 = vsel %vm148_vm3, %v1398_v15, %v145_v21 }
  0xa4   :  { %v154_v24 = vsel %vm151_vm4, %v153_v22, %v149_v23 }
  0xa5   :  { %v156_v25 = vmul.f32 2.0, %v154_v24  ;;  %v158_v29 = vmul.f32 0.0, %v154_v24 }
  0xa7   :  { %v1333_v26 = vadd.f32 -1.0, %v156_v25 }
  0xa9   :  { %160 = vrot.lane.b32.xlu0 %v1333_v26, %s1494_s23 }
 0x11b   :  { %v161_v27 = vpop.permute.xlu0 %160 }
 0x11c   :  { %v163_v28 = vmul.f32 %v161_v27, %v154_v24 }
 0x11e   :  { %165 = vrot.lane.b32.xlu0 %v163_v28, %s1495_s24 }
 0x190   :  { %v166_v30 = vpop.permute.xlu0 %165 }
 0x191   :  { %v1558_v31 = vadd.f32 %v166_v30, %v158_v29 }
 0x193   :  { %1399 = vtanh.f32 %v1558_v31 }
 0x199   :  { %v1400_v32 = vpop.eup %1399 }
 0x19a   :  { %171 = vrot.lane.b32.xlu1 %v1400_v32, %s1494_s23 }
 0x20c   :  { %v172_v38 = vpop.permute.xlu1 %171 }
 0x20d   :  { %v174_v39 = vmul.f32 %v172_v38, %v154_v24  ;;  %v1629_v38 = vld [vmem:[%s1903_s1 + $0x60] sm:$0xff] }
 0x20e   :  { %255 = vmatpush.msra.mxu3 %v1629_v38 }
 0x20f   :  { %176 = vrot.lane.b32.xlu1 %v174_v39, %s1495_s24  ;;  %v1640_v39 = vld [vmem:[%s1903_s1 + $0x50] sm:$0xff] }
 0x281   :  { %v177_v40 = vpop.permute.xlu1 %176 }
 0x282   :  { %1334 = vmatmul.msk.f32.vlgmr.msra.gmra.mxu2 %vm112_vm5, %v177_v40  ;;  %1338 = vmatmul.msk.f32.vlgmr.msrb.gmra.mxu1 %vm112_vm5, %v177_v40  ;;  %v1646_v40 = vld [vmem:[%s1903_s1 + $0x48] sm:$0xff] }
 0x283   :  { %569 = vmatpush.msrb.mxu1 %v1514_v0  ;;  %486 = vmatpush.msra.mxu2 %v1565_v33 }
 0x285   :  { %570 = vmatpush.msrb.mxu1 %v1519_v1  ;;  %487 = vmatpush.msra.mxu2 %v1570_v34 }
 0x287   :  { %571 = vmatpush.msrb.mxu1 %v1531_v4  ;;  %488 = vmatpush.msra.mxu2 %v1579_v36 }
 0x289   :  { %572 = vmatpush.msrb.mxu1 %v1538_v5  ;;  %489 = vmatpush.msra.mxu2 %v1586_v37 }
 0x2ff   :  { %v280_v43 = vpop.f32.mrf.mxu1 }
 0x300   :  { %v283_v44 = vadd.f32 %v280_v43, %v91_v42  ;;  %v38_v43 = vld [vmem:[%s1904_s0 + $0x10] sm:$0xff] }
 0x301   :  { %1326 = vmatmul.msk.f32.gmra.mxu0 %vm45_vm0, %v38_v43 }
 0x302   :  { %v1339_v45 = vmul.f32 -1.442695, %v283_v44 }
 0x304   :  { %1401 = vpow2.f32 %v1339_v45 }
 0x305   :  { %v197_v47 = vpop.f32.mrf.mxu2 }
 0x306   :  { %v198_v48 = vadd.f32 %v1609_v46, %v197_v47 }
 0x308   :  { %v1335_v49 = vmul.f32 -1.442695, %v198_v48 }
 0x30a   :  { %v1402_v50 = vpop.eup %1401  ;;  %1403 = vpow2.f32 %v1335_v49 }
 0x30b   :  { %v287_v51 = vadd.f32 1.0, %v1402_v50 }
 0x30d   :  { %1405 = vrcp.f32 %v287_v51  ;;  %v299_v8 = vand.u32 2147483648, %v287_v51  ;;  %vm293_vm11 = vweird.f32 %v287_v51  ;;  %v297_v10 = vand.u32 2147483647, %v287_v51 }
 0x30f   :  { %v300_v14 = vor.u32 1.1754944e-38, %v299_v8  ;;  %vm298_vm13 = vcmp.eq.f32.partialorder %v297_v10, 8.507059e+37 }
 0x310   :  { %v1404_v52 = vpop.eup %1403 }
 0x311   :  { %v203_v53 = vadd.f32 1.0, %v1404_v52 }
 0x313   :  { %v1406_v54 = vpop.eup %1405  ;;  %1407 = vrcp.f32 %v203_v53  ;;  %v215_v61 = vand.u32 2147483648, %v203_v53  ;;  %v213_v63 = vand.u32 2147483647, %v203_v53  ;;  %vm209_vm7 = vweird.f32 %v203_v53 }
 0x314   :  { %v289_v55 = vmul.f32 %v1406_v54, %v287_v51  ;;  %vm294_vm8 = vweird.f32 %v1406_v54 }
 0x315   :  { %v216_v6 = vor.u32 1.1754944e-38, %v215_v61  ;;  %vm214_vm10 = vcmp.eq.f32.partialorder %v213_v63, 8.507059e+37  ;;  %vm295_vm12 = vmor %vm293_vm11, %vm294_vm8 }
 0x316   :  { %v290_v56 = vsub.f32 1.0, %v289_v55 }
 0x318   :  { %v291_v60 = vmul.f32 %v1406_v54, %v290_v56 }
 0x319   :  { %v1408_v57 = vpop.eup %1407 }
 0x31a   :  { %v205_v58 = vmul.f32 %v1408_v57, %v203_v53  ;;  %vm210_vm6 = vweird.f32 %v1408_v57  ;;  %v292_v3 = vadd.f32 %v1406_v54, %v291_v60 }
 0x31b   :  { %vm211_vm9 = vmor %vm209_vm7, %vm210_vm6 }
 0x31c   :  { %v206_v59 = vsub.f32 1.0, %v205_v58  ;;  %v296_v13 = vsel %vm295_vm12, %v1406_v54, %v292_v3 }
 0x31d   :  { %v301_v16 = vsel %vm298_vm13, %v300_v14, %v296_v13 }
 0x31e   :  { %v207_v62 = vmul.f32 %v1408_v57, %v206_v59  ;;  %v303_v17 = vmul.f32 2.0, %v301_v16  ;;  %v305_v26 = vmul.f32 %v301_v16, %v1558_v31  ;;  %v1634_v31 = vld [vmem:[%s1903_s1 + $0x58] sm:$0xff] }
 0x31f   :  { %256 = vmatpush.msra.mxu3 %v1634_v31 }
 0x320   :  { %v208_v2 = vadd.f32 %v1408_v57, %v207_v62  ;;  %v1340_v18 = vadd.f32 -1.0, %v303_v17 }
 0x321   :  { %257 = vmatpush.msra.mxu3 %v1640_v39 }
 0x322   :  { %v212_v9 = vsel %vm211_vm9, %v1408_v57, %v208_v2 }
 0x323   :  { %v217_v11 = vsel %vm214_vm10, %v216_v6, %v212_v9  ;;  %258 = vmatpush.msra.mxu3 %v1646_v40 }
 0x324   :  { %v219_v12 = vmul.f32 2.0, %v217_v11  ;;  %v221_v23 = vmul.f32 0.0, %v217_v11 }
 0x325   :  { %402 = vmatpush.msrb.mxu3 %v1629_v38 }
 0x326   :  { %v1336_v15 = vadd.f32 -1.0, %v219_v12 }
 0x327   :  { %403 = vmatpush.msrb.mxu3 %v1634_v31 }
 0x328   :  { %223 = vrot.lane.b32.xlu2 %v1336_v15, %s1494_s23 }
 0x329   :  { %404 = vmatpush.msrb.mxu3 %v1640_v39 }
 0x32b   :  { %405 = vmatpush.msrb.mxu3 %v1646_v40 }
 0x330   :  { %307 = vrot.lane.b32.xlu2 %v1340_v18, %s1494_s23 }
 0x37e   :  { %v93_v47 = vpop.f32.mrf.mxu0 }
 0x37f   :  { %v94_v48 = vadd.f32 %v1553_v7, %v93_v47 }
 0x382   :  { %v224_v19 = vpop.permute.xlu2 %223 }
 0x383   :  { %v226_v20 = vmul.f32 %v224_v19, %v217_v11 }
 0x385   :  { %228 = vrot.lane.b32.xlu0 %v226_v20, %s1495_s24 }
 0x38a   :  { %v308_v21 = vpop.permute.xlu2 %307 }
 0x38b   :  { %v310_v22 = vmul.f32 %v308_v21, %v301_v16 }
 0x38d   :  { %312 = vrot.lane.b32.xlu1 %v310_v22, %s1495_s24 }
 0x3f7   :  { %v229_v24 = vpop.permute.xlu0 %228 }
 0x3f8   :  { %v1616_v25 = vadd.f32 %v229_v24, %v221_v23 }
 0x3fa   :  { %1409 = vtanh.f32 %v1616_v25 }
 0x3ff   :  { %v313_v27 = vpop.permute.xlu1 %312 }
 0x400   :  { %v1410_v28 = vpop.eup %1409  ;;  %v1620_v29 = vadd.f32 %v313_v27, %v305_v26 }
 0x401   :  { %234 = vrot.lane.b32.xlu2 %v1410_v28, %s1494_s23 }
 0x402   :  { %1411 = vtanh.f32 %v1620_v29 }
 0x408   :  { %v1412_v30 = vpop.eup %1411 }
 0x409   :  { %318 = vrot.lane.b32.xlu0 %v1412_v30, %s1494_s23 }
 0x45b   :  { %v235_v32 = vpop.permute.xlu2 %234 }
 0x45c   :  { %v237_v35 = vmul.f32 %v235_v32, %v217_v11 }
 0x45e   :  { %239 = vrot.lane.b32.xlu1 %v237_v35, %s1495_s24 }
 0x47b   :  { %v319_v41 = vpop.permute.xlu0 %318 }
 0x47c   :  { %v321_v42 = vmul.f32 %v319_v41, %v301_v16 }
 0x47e   :  { %323 = vrot.lane.b32.xlu2 %v321_v42, %s1495_s24 }
 0x4d0   :  { %v240_v44 = vpop.permute.xlu1 %239 }
 0x4d1   :  { %1337 = vmatmul.msk.f32.vlgmr.msra.gmra.mxu3 %vm112_vm5, %v240_v44 }
 0x4d2   :  { %549 = vmatpush.msra.mxu3 %v1629_v38 }
 0x4d4   :  { %550 = vmatpush.msra.mxu3 %v1634_v31 }
 0x4d6   :  { %551 = vmatpush.msra.mxu3 %v1640_v39 }
 0x4d8   :  { %v324_v45 = vpop.permute.xlu2 %323  ;;  %552 = vmatpush.msra.mxu3 %v1646_v40 }
 0x4d9   :  { %1341 = vmatmul.msk.f32.vlgmr.msrb.gmra.mxu2 %vm112_vm5, %v324_v45  ;;  %1345 = vmatmul.msk.f32.vlgmr.msra.gmra.mxu1 %vm112_vm5, %v324_v45 }
 0x4da   :  { %633 = vmatpush.msrb.mxu2 %v1565_v33  ;;  %716 = vmatpush.msra.mxu1 %v1514_v0 }
 0x4dc   :  { %634 = vmatpush.msrb.mxu2 %v1570_v34  ;;  %717 = vmatpush.msra.mxu1 %v1519_v1 }
 0x4de   :  { %635 = vmatpush.msrb.mxu2 %v1579_v36  ;;  %718 = vmatpush.msra.mxu1 %v1531_v4 }
 0x4e0   :  { %636 = vmatpush.msrb.mxu2 %v1586_v37  ;;  %719 = vmatpush.msra.mxu1 %v1538_v5 }
 0x554   :  { %v260_v51 = vpop.f32.mrf.mxu3 }
 0x555   :  { %v261_v53 = vadd.f32 %v1609_v46, %v260_v51 }
 0x556   :  { %v427_v49 = vpop.f32.mrf.mxu1 }
 0x557   :  { %v430_v50 = vadd.f32 %v427_v49, %v94_v48 }
 0x559   :  { %v1346_v52 = vmul.f32 -1.442695, %v430_v50 }
 0x55b   :  { %1413 = vpow2.f32 %v1346_v52 }
 0x55c   :  { %v344_v54 = vpop.f32.mrf.mxu2 }
 0x55d   :  { %v345_v55 = vadd.f32 %v344_v54, %v261_v53 }
 0x55f   :  { %v1342_v56 = vmul.f32 -1.442695, %v345_v55 }
 0x561   :  { %v1414_v57 = vpop.eup %1413  ;;  %1415 = vpow2.f32 %v1342_v56 }
 0x562   :  { %v434_v58 = vadd.f32 1.0, %v1414_v57 }
 0x564   :  { %1417 = vrcp.f32 %v434_v58  ;;  %v446_v2 = vand.u32 2147483648, %v434_v58  ;;  %v444_v6 = vand.u32 2147483647, %v434_v58  ;;  %vm440_vm15 = vweird.f32 %v434_v58 }
 0x566   :  { %v447_v11 = vor.u32 1.1754944e-38, %v446_v2  ;;  %vm445_vm2 = vcmp.eq.f32.partialorder %v444_v6, 8.507059e+37 }
 0x567   :  { %v1416_v59 = vpop.eup %1415 }
 0x568   :  { %v350_v60 = vadd.f32 1.0, %v1416_v59 }
 0x56a   :  { %v1418_v61 = vpop.eup %1417  ;;  %1419 = vrcp.f32 %v350_v60  ;;  %v362_v15 = vand.u32 2147483648, %v350_v60  ;;  %v360_v18 = vand.u32 2147483647, %v350_v60  ;;  %vm356_vm4 = vweird.f32 %v350_v60 }
 0x56b   :  { %v436_v62 = vmul.f32 %v1418_v61, %v434_v58  ;;  %vm441_vm14 = vweird.f32 %v1418_v61 }
 0x56c   :  { %vm442_vm1 = vmor %vm440_vm15, %vm441_vm14  ;;  %v363_v21 = vor.u32 1.1754944e-38, %v362_v15  ;;  %vm361_vm7 = vcmp.eq.f32.partialorder %v360_v18, 8.507059e+37 }
 0x56d   :  { %v437_v63 = vsub.f32 1.0, %v436_v62 }
 0x56f   :  { %v438_v3 = vmul.f32 %v1418_v61, %v437_v63 }
 0x570   :  { %v1420_v8 = vpop.eup %1419 }
 0x571   :  { %v352_v9 = vmul.f32 %v1420_v8, %v350_v60  ;;  %v439_v10 = vadd.f32 %v1418_v61, %v438_v3  ;;  %vm357_vm3 = vweird.f32 %v1420_v8 }
 0x572   :  { %vm358_vm6 = vmor %vm356_vm4, %vm357_vm3 }
 0x573   :  { %v353_v12 = vsub.f32 1.0, %v352_v9  ;;  %v443_v13 = vsel %vm442_vm1, %v1418_v61, %v439_v10 }
 0x574   :  { %v448_v14 = vsel %vm445_vm2, %v447_v11, %v443_v13 }
 0x575   :  { %v450_v16 = vmul.f32 2.0, %v448_v14  ;;  %v354_v17 = vmul.f32 %v1420_v8, %v353_v12  ;;  %v452_v44 = vmul.f32 %v448_v14, %v1620_v29 }
 0x577   :  { %v1347_v19 = vadd.f32 -1.0, %v450_v16  ;;  %v355_v20 = vadd.f32 %v1420_v8, %v354_v17 }
 0x579   :  { %454 = vrot.lane.b32.xlu1 %v1347_v19, %s1494_s23  ;;  %v359_v22 = vsel %vm358_vm6, %v1420_v8, %v355_v20 }
 0x57a   :  { %v364_v23 = vsel %vm361_vm7, %v363_v21, %v359_v22 }
 0x57b   :  { %v366_v24 = vmul.f32 2.0, %v364_v23  ;;  %v368_v35 = vmul.f32 %v364_v23, %v1616_v25  ;;  %v39_v25 = vld [vmem:[%s1904_s0 + $0x18] sm:$0xff] }
 0x57c   :  { %1327 = vmatmul.msk.f32.gmra.mxu0 %vm45_vm0, %v39_v25 }
 0x57d   :  { %v1343_v26 = vadd.f32 -1.0, %v366_v24 }
 0x57f   :  { %370 = vrot.lane.b32.xlu0 %v1343_v26, %s1494_s23 }
 0x5eb   :  { %v455_v27 = vpop.permute.xlu1 %454 }
 0x5ec   :  { %v457_v28 = vmul.f32 %v455_v27, %v448_v14 }
 0x5ee   :  { %459 = vrot.lane.b32.xlu0 %v457_v28, %s1495_s24 }
 0x5f1   :  { %v371_v30 = vpop.permute.xlu0 %370 }
 0x5f2   :  { %v373_v32 = vmul.f32 %v371_v30, %v364_v23 }
 0x5f4   :  { %375 = vrot.lane.b32.xlu2 %v373_v32, %s1495_s24 }
 0x5f9   :  { %v96_v54 = vpop.f32.mrf.mxu0 }
 0x5fa   :  { %v97_v55 = vadd.f32 %v1553_v7, %v96_v54 }
 0x64e   :  { %v376_v41 = vpop.permute.xlu2 %375 }
 0x64f   :  { %v1681_v42 = vadd.f32 %v376_v41, %v368_v35 }
 0x651   :  { %1421 = vtanh.f32 %v1681_v42 }
 0x657   :  { %v1422_v43 = vpop.eup %1421 }
 0x658   :  { %381 = vrot.lane.b32.xlu1 %v1422_v43, %s1494_s23 }
 0x660   :  { %v460_v45 = vpop.permute.xlu0 %459 }
 0x661   :  { %v1686_v47 = vadd.f32 %v460_v45, %v452_v44 }
 0x663   :  { %1423 = vtanh.f32 %v1686_v47 }
 0x669   :  { %v1424_v48 = vpop.eup %1423 }
 0x66a   :  { %465 = vrot.lane.b32.xlu2 %v1424_v48, %s1494_s23 }
 0x6c4   :  { %v466_v49 = vpop.permute.xlu2 %465 }
 0x6c5   :  { %v468_v50 = vmul.f32 %v466_v49, %v448_v14 }
 0x6c7   :  { %470 = vrot.lane.b32.xlu1 %v468_v50, %s1495_s24 }
 0x6ca   :  { %v382_v51 = vpop.permute.xlu1 %381 }
 0x6cb   :  { %v384_v29 = vmul.f32 %v382_v51, %v364_v23 }
 0x6cd   :  { %386 = vrot.lane.b32.xlu0 %v384_v29, %s1495_s24 }
 0x739   :  { %v471_v52 = vpop.permute.xlu1 %470 }
 0x73a   :  { %1348 = vmatmul.msk.f32.vlgmr.msra.gmra.mxu2 %vm112_vm5, %v471_v52  ;;  %1352 = vmatmul.msk.f32.vlgmr.msrb.gmra.mxu1 %vm112_vm5, %v471_v52 }
 0x73b   :  { %780 = vmatpush.msra.mxu2 %v1565_v33  ;;  %863 = vmatpush.msrb.mxu1 %v1514_v0 }
 0x73d   :  { %781 = vmatpush.msra.mxu2 %v1570_v34  ;;  %864 = vmatpush.msrb.mxu1 %v1519_v1 }
 0x73f   :  { %v387_v53 = vpop.permute.xlu0 %386  ;;  %782 = vmatpush.msra.mxu2 %v1579_v36  ;;  %865 = vmatpush.msrb.mxu1 %v1531_v4 }
 0x740   :  { %1344 = vmatmul.msk.f32.vlgmr.msrb.gmra.mxu3 %vm112_vm5, %v387_v53 }
 0x741   :  { %783 = vmatpush.msra.mxu2 %v1586_v37  ;;  %866 = vmatpush.msrb.mxu1 %v1538_v5 }
 0x742   :  { %696 = vmatpush.msrb.mxu3 %v1629_v38 }
 0x744   :  { %697 = vmatpush.msrb.mxu3 %v1634_v31 }
 0x746   :  { %698 = vmatpush.msrb.mxu3 %v1640_v39 }
 0x748   :  { %699 = vmatpush.msrb.mxu3 %v1646_v40 }
 0x7b7   :  { %v574_v56 = vpop.f32.mrf.mxu1 }
 0x7b8   :  { %v577_v57 = vadd.f32 %v574_v56, %v97_v55 }
 0x7ba   :  { %v1353_v58 = vmul.f32 -1.442695, %v577_v57 }
 0x7bc   :  { %1425 = vpow2.f32 %v1353_v58 }
 0x7bd   :  { %v491_v63 = vpop.f32.mrf.mxu2 }
 0x7c2   :  { %v1426_v59 = vpop.eup %1425 }
 0x7c3   :  { %v581_v60 = vadd.f32 1.0, %v1426_v59  ;;  %v407_v61 = vpop.f32.mrf.mxu3 }
 0x7c4   :  { %v408_v62 = vadd.f32 %v1609_v46, %v407_v61 }
 0x7c5   :  { %1427 = vrcp.f32 %v581_v60  ;;  %v593_v10 = vand.u32 2147483648, %v581_v60  ;;  %v591_v13 = vand.u32 2147483647, %v581_v60  ;;  %vm587_vm9 = vweird.f32 %v581_v60 }
 0x7c6   :  { %v492_v2 = vadd.f32 %v491_v63, %v408_v62 }
 0x7c7   :  { %v594_v16 = vor.u32 1.1754944e-38, %v593_v10  ;;  %vm592_vm11 = vcmp.eq.f32.partialorder %v591_v13, 8.507059e+37 }
 0x7c8   :  { %v1349_v3 = vmul.f32 -1.442695, %v492_v2 }
 0x7ca   :  { %1429 = vpow2.f32 %v1349_v3 }
 0x7cb   :  { %v1428_v6 = vpop.eup %1427 }
 0x7cc   :  { %v583_v8 = vmul.f32 %v1428_v6, %v581_v60  ;;  %vm588_vm8 = vweird.f32 %v1428_v6 }
 0x7cd   :  { %vm589_vm10 = vmor %vm587_vm9, %vm588_vm8 }
 0x7ce   :  { %v584_v9 = vsub.f32 1.0, %v583_v8 }
 0x7d0   :  { %v1430_v11 = vpop.eup %1429  ;;  %v585_v12 = vmul.f32 %v1428_v6, %v584_v9 }
 0x7d1   :  { %v497_v14 = vadd.f32 1.0, %v1430_v11 }
 0x7d2   :  { %v586_v15 = vadd.f32 %v1428_v6, %v585_v12 }
 0x7d3   :  { %1431 = vrcp.f32 %v497_v14  ;;  %v509_v24 = vand.u32 2147483648, %v497_v14  ;;  %v507_v27 = vand.u32 2147483647, %v497_v14  ;;  %vm503_vm13 = vweird.f32 %v497_v14 }
 0x7d4   :  { %v590_v17 = vsel %vm589_vm10, %v1428_v6, %v586_v15 }
 0x7d5   :  { %v595_v18 = vsel %vm592_vm11, %v594_v16, %v590_v17  ;;  %v510_v30 = vor.u32 1.1754944e-38, %v509_v24  ;;  %vm508_vm15 = vcmp.eq.f32.partialorder %v507_v27, 8.507059e+37 }
 0x7d6   :  { %v597_v19 = vmul.f32 2.0, %v595_v18  ;;  %v599_v49 = vmul.f32 %v595_v18, %v1686_v47 }
 0x7d8   :  { %v1354_v20 = vadd.f32 -1.0, %v597_v19 }
 0x7d9   :  { %v1432_v21 = vpop.eup %1431 }
 0x7da   :  { %v499_v22 = vmul.f32 %v1432_v21, %v497_v14  ;;  %601 = vrot.lane.b32.xlu0 %v1354_v20, %s1494_s23  ;;  %vm504_vm12 = vweird.f32 %v1432_v21 }
 0x7db   :  { %vm505_vm14 = vmor %vm503_vm13, %vm504_vm12 }
 0x7dc   :  { %v500_v23 = vsub.f32 1.0, %v499_v22 }
 0x7de   :  { %v501_v26 = vmul.f32 %v1432_v21, %v500_v23 }
 0x7e0   :  { %v502_v28 = vadd.f32 %v1432_v21, %v501_v26 }
 0x7e2   :  { %v506_v32 = vsel %vm505_vm14, %v1432_v21, %v502_v28 }
 0x7e3   :  { %v511_v35 = vsel %vm508_vm15, %v510_v30, %v506_v32 }
 0x7e4   :  { %v513_v41 = vmul.f32 2.0, %v511_v35  ;;  %v515_v52 = vmul.f32 %v511_v35, %v1681_v42  ;;  %v40_v42 = vld [vmem:[%s1904_s0 + $0x20] sm:$0xff] }
 0x7e5   :  { %1328 = vmatmul.msk.f32.gmra.mxu0 %vm45_vm0, %v40_v42 }
 0x7e6   :  { %v1350_v43 = vadd.f32 -1.0, %v513_v41 }
 0x7e8   :  { %517 = vrot.lane.b32.xlu2 %v1350_v43, %s1494_s23 }
 0x842   :  { %v518_v44 = vpop.permute.xlu2 %517 }
 0x843   :  { %v520_v45 = vmul.f32 %v518_v44, %v511_v35 }
 0x845   :  { %522 = vrot.lane.b32.xlu1 %v520_v45, %s1495_s24 }
 0x84c   :  { %v602_v48 = vpop.permute.xlu0 %601 }
 0x84d   :  { %v604_v25 = vmul.f32 %v602_v48, %v595_v18 }
 0x84f   :  { %606 = vrot.lane.b32.xlu2 %v604_v25, %s1495_s24 }
 0x862   :  { %v99_v61 = vpop.f32.mrf.mxu0 }
 0x863   :  { %v100_v62 = vadd.f32 %v1553_v7, %v99_v61 }
 0x8a9   :  { %v607_v50 = vpop.permute.xlu2 %606 }
 0x8aa   :  { %v1718_v51 = vadd.f32 %v607_v50, %v599_v49 }
 0x8ac   :  { %1433 = vtanh.f32 %v1718_v51 }
 0x8b2   :  { %v1434_v29 = vpop.eup %1433 }
 0x8b3   :  { %612 = vrot.lane.b32.xlu1 %v1434_v29, %s1494_s23 }
 0x8b7   :  { %v523_v53 = vpop.permute.xlu1 %522 }
 0x8b8   :  { %v1723_v54 = vadd.f32 %v523_v53, %v515_v52 }
 0x8ba   :  { %1435 = vtanh.f32 %v1723_v54 }
 0x8c0   :  { %v1436_v55 = vpop.eup %1435 }
 0x8c1   :  { %528 = vrot.lane.b32.xlu0 %v1436_v55, %s1494_s23 }
 0x925   :  { %v613_v56 = vpop.permute.xlu1 %612 }
 0x926   :  { %v615_v47 = vmul.f32 %v613_v56, %v595_v18 }
 0x928   :  { %617 = vrot.lane.b32.xlu0 %v615_v47, %s1495_s24 }
 0x933   :  { %v529_v57 = vpop.permute.xlu0 %528 }
 0x934   :  { %v531_v58 = vmul.f32 %v529_v57, %v511_v35 }
 0x936   :  { %533 = vrot.lane.b32.xlu2 %v531_v58, %s1495_s24 }
 0x990   :  { %v534_v59 = vpop.permute.xlu2 %533 }
 0x991   :  { %1351 = vmatmul.msk.f32.vlgmr.msra.gmra.mxu3 %vm112_vm5, %v534_v59 }
 0x992   :  { %843 = vmatpush.msra.mxu3 %v1629_v38 }
 0x994   :  { %844 = vmatpush.msra.mxu3 %v1634_v31 }
 0x996   :  { %845 = vmatpush.msra.mxu3 %v1640_v39 }
 0x998   :  { %846 = vmatpush.msra.mxu3 %v1646_v40 }
 0x99a   :  { %v618_v60 = vpop.permute.xlu0 %617 }
 0x99b   :  { %1355 = vmatmul.msk.f32.vlgmr.msrb.gmra.mxu2 %vm112_vm5, %v618_v60  ;;  %1359 = vmatmul.msk.f32.vlgmr.msra.gmra.mxu1 %vm112_vm5, %v618_v60 }
 0x99c   :  { %927 = vmatpush.msrb.mxu2 %v1565_v33  ;;  %1010 = vmatpush.msra.mxu1 %v1514_v0 }
 0x99e   :  { %928 = vmatpush.msrb.mxu2 %v1570_v34  ;;  %1011 = vmatpush.msra.mxu1 %v1519_v1 }
 0x9a0   :  { %929 = vmatpush.msrb.mxu2 %v1579_v36  ;;  %1012 = vmatpush.msra.mxu1 %v1531_v4 }
 0x9a2   :  { %930 = vmatpush.msrb.mxu2 %v1586_v37  ;;  %1013 = vmatpush.msra.mxu1 %v1538_v5 }
 0xa14   :  { %v554_v3 = vpop.f32.mrf.mxu3 }
 0xa15   :  { %v555_v8 = vadd.f32 %v1609_v46, %v554_v3 }
 0xa18   :  { %v721_v63 = vpop.f32.mrf.mxu1 }
 0xa19   :  { %v724_v2 = vadd.f32 %v721_v63, %v100_v62 }
 0xa1b   :  { %v1360_v6 = vmul.f32 -1.442695, %v724_v2 }
 0xa1d   :  { %1437 = vpow2.f32 %v1360_v6 }
 0xa1e   :  { %v638_v9 = vpop.f32.mrf.mxu2 }
 0xa1f   :  { %v639_v10 = vadd.f32 %v638_v9, %v555_v8 }
 0xa21   :  { %v1356_v11 = vmul.f32 -1.442695, %v639_v10 }
 0xa23   :  { %v1438_v12 = vpop.eup %1437  ;;  %1439 = vpow2.f32 %v1356_v11 }
 0xa24   :  { %v728_v13 = vadd.f32 1.0, %v1438_v12 }
 0xa26   :  { %1441 = vrcp.f32 %v728_v13  ;;  %v740_v19 = vand.u32 2147483648, %v728_v13  ;;  %v738_v21 = vand.u32 2147483647, %v728_v13  ;;  %vm734_vm2 = vweird.f32 %v728_v13 }
 0xa28   :  { %v741_v26 = vor.u32 1.1754944e-38, %v740_v19  ;;  %vm739_vm4 = vcmp.eq.f32.partialorder %v738_v21, 8.507059e+37 }
 0xa29   :  { %v1440_v14 = vpop.eup %1439 }
 0xa2a   :  { %v644_v15 = vadd.f32 1.0, %v1440_v14 }
 0xa2c   :  { %v1442_v16 = vpop.eup %1441  ;;  %1443 = vrcp.f32 %v644_v15  ;;  %v656_v32 = vand.u32 2147483648, %v644_v15  ;;  %v654_v43 = vand.u32 2147483647, %v644_v15  ;;  %vm650_vm7 = vweird.f32 %v644_v15 }
 0xa2d   :  { %v730_v17 = vmul.f32 %v1442_v16, %v728_v13  ;;  %vm735_vm1 = vweird.f32 %v1442_v16 }
 0xa2e   :  { %vm736_vm3 = vmor %vm734_vm2, %vm735_vm1  ;;  %v657_v48 = vor.u32 1.1754944e-38, %v656_v32  ;;  %vm655_vm9 = vcmp.eq.f32.partialorder %v654_v43, 8.507059e+37 }
 0xa2f   :  { %v731_v18 = vsub.f32 1.0, %v730_v17 }
 0xa31   :  { %v732_v20 = vmul.f32 %v1442_v16, %v731_v18 }
 0xa32   :  { %v1444_v22 = vpop.eup %1443 }
 0xa33   :  { %v646_v23 = vmul.f32 %v1444_v22, %v644_v15  ;;  %v733_v24 = vadd.f32 %v1442_v16, %v732_v20  ;;  %vm651_vm6 = vweird.f32 %v1444_v22 }
 0xa34   :  { %vm652_vm8 = vmor %vm650_vm7, %vm651_vm6 }
 0xa35   :  { %v647_v27 = vsub.f32 1.0, %v646_v23  ;;  %v737_v28 = vsel %vm736_vm3, %v1442_v16, %v733_v24 }
 0xa36   :  { %v742_v30 = vsel %vm739_vm4, %v741_v26, %v737_v28 }
 0xa37   :  { %v744_v35 = vmul.f32 2.0, %v742_v30  ;;  %v648_v41 = vmul.f32 %v1444_v22, %v647_v27  ;;  %v746_v47 = vmul.f32 %v742_v30, %v1718_v51  ;;  %v41_v51 = vld [vmem:[%s1904_s0 + $0x28] sm:$0xff] }
 0xa38   :  { %1329 = vmatmul.msk.f32.gmra.mxu0 %vm45_vm0, %v41_v51 }
 0xa39   :  { %v1361_v44 = vadd.f32 -1.0, %v744_v35  ;;  %v649_v45 = vadd.f32 %v1444_v22, %v648_v41 }
 0xa3b   :  { %748 = vrot.lane.b32.xlu2 %v1361_v44, %s1494_s23  ;;  %v653_v25 = vsel %vm652_vm8, %v1444_v22, %v649_v45 }
 0xa3c   :  { %v658_v49 = vsel %vm655_vm9, %v657_v48, %v653_v25 }
 0xa3d   :  { %v660_v50 = vmul.f32 2.0, %v658_v49  ;;  %v662_v59 = vmul.f32 %v658_v49, %v1723_v54 }
 0xa3f   :  { %v1357_v29 = vadd.f32 -1.0, %v660_v50 }
 0xa41   :  { %664 = vrot.lane.b32.xlu1 %v1357_v29, %s1494_s23 }
 0xa95   :  { %v749_v52 = vpop.permute.xlu2 %748 }
 0xa96   :  { %v751_v53 = vmul.f32 %v749_v52, %v742_v30 }
 0xa98   :  { %753 = vrot.lane.b32.xlu1 %v751_v53, %s1495_s24 }
 0xab3   :  { %v665_v55 = vpop.permute.xlu1 %664 }
 0xab4   :  { %v667_v56 = vmul.f32 %v665_v55, %v658_v49 }
 0xab6   :  { %669 = vrot.lane.b32.xlu0 %v667_v56, %s1495_s24 }
 0xb0a   :  { %v754_v57 = vpop.permute.xlu1 %753 }
 0xb0b   :  { %v1755_v58 = vadd.f32 %v754_v57, %v746_v47 }
 0xb0d   :  { %1445 = vtanh.f32 %v1755_v58 }
 0xb13   :  { %v1446_v42 = vpop.eup %1445 }
 0xb14   :  { %759 = vrot.lane.b32.xlu0 %v1446_v42, %s1494_s23 }
 0xb28   :  { %v670_v60 = vpop.permute.xlu0 %669 }
 0xb29   :  { %v1760_v61 = vadd.f32 %v670_v60, %v662_v59 }
 0xb2b   :  { %1447 = vtanh.f32 %v1760_v61 }
 0xb31   :  { %v1448_v62 = vpop.eup %1447 }
 0xb32   :  { %675 = vrot.lane.b32.xlu2 %v1448_v62, %s1494_s23 }
 0xb86   :  { %v760_v63 = vpop.permute.xlu0 %759 }
 0xb87   :  { %v762_v2 = vmul.f32 %v760_v63, %v742_v30 }
 0xb89   :  { %764 = vrot.lane.b32.xlu2 %v762_v2, %s1495_s24 }
 0xb8c   :  { %v676_v3 = vpop.permute.xlu2 %675 }
 0xb8d   :  { %v678_v54 = vmul.f32 %v676_v3, %v658_v49 }
 0xb8f   :  { %680 = vrot.lane.b32.xlu1 %v678_v54, %s1495_s24 }
 0xbe3   :  { %v765_v6 = vpop.permute.xlu2 %764 }
 0xbe4   :  { %1362 = vmatmul.msk.f32.vlgmr.msra.gmra.mxu2 %vm112_vm5, %v765_v6  ;;  %1366 = vmatmul.msk.f32.vlgmr.msrb.gmra.mxu1 %vm112_vm5, %v765_v6  ;;  %v42_v6 = vld [vmem:[%s1904_s0 + $0x30] sm:$0xff] }
 0xbe5   :  { %1074 = vmatpush.msra.mxu2 %v1565_v33  ;;  %1157 = vmatpush.msrb.mxu1 %v1514_v0  ;;  %v102_v0 = vpop.f32.mrf.mxu0 }
 0xbe6   :  { %1330 = vmatmul.msk.f32.gmra.mxu0 %vm45_vm0, %v42_v6 }
 0xbe7   :  { %1075 = vmatpush.msra.mxu2 %v1570_v34  ;;  %1158 = vmatpush.msrb.mxu1 %v1519_v1  ;;  %v103_v1 = vadd.f32 %v1553_v7, %v102_v0 }
 0xbe9   :  { %1076 = vmatpush.msra.mxu2 %v1579_v36  ;;  %1159 = vmatpush.msrb.mxu1 %v1531_v4 }
 0xbeb   :  { %1077 = vmatpush.msra.mxu2 %v1586_v37  ;;  %1160 = vmatpush.msrb.mxu1 %v1538_v5 }
 0xc01   :  { %v681_v8 = vpop.permute.xlu1 %680 }
 0xc02   :  { %1358 = vmatmul.msk.f32.vlgmr.msrb.gmra.mxu3 %vm112_vm5, %v681_v8 }
 0xc03   :  { %990 = vmatpush.msrb.mxu3 %v1629_v38 }
 0xc05   :  { %991 = vmatpush.msrb.mxu3 %v1634_v31 }
 0xc07   :  { %992 = vmatpush.msrb.mxu3 %v1640_v39 }
 0xc09   :  { %993 = vmatpush.msrb.mxu3 %v1646_v40 }
 0xc61   :  { %v868_v9 = vpop.f32.mrf.mxu1 }
 0xc62   :  { %v871_v4 = vadd.f32 %v868_v9, %v103_v1 }
 0xc63   :  { %v105_v9 = vpop.f32.mrf.mxu0 }
 0xc64   :  { %v1367_v10 = vmul.f32 -1.442695, %v871_v4 }
 0xc66   :  { %1449 = vpow2.f32 %v1367_v10 }
 0xc67   :  { %v785_v26 = vpop.f32.mrf.mxu2 }
 0xc6c   :  { %v1450_v11 = vpop.eup %1449 }
 0xc6d   :  { %v875_v5 = vadd.f32 1.0, %v1450_v11 }
 0xc6f   :  { %1451 = vrcp.f32 %v875_v5  ;;  %v887_v15 = vand.u32 2147483648, %v875_v5  ;;  %v885_v17 = vand.u32 2147483647, %v875_v5  ;;  %vm881_vm11 = vweird.f32 %v875_v5 }
 0xc71   :  { %v888_v19 = vor.u32 1.1754944e-38, %v887_v15  ;;  %vm886_vm13 = vcmp.eq.f32.partialorder %v885_v17, 8.507059e+37 }
 0xc75   :  { %v1452_v12 = vpop.eup %1451 }
 0xc76   :  { %v877_v13 = vmul.f32 %v1452_v12, %v875_v5  ;;  %vm882_vm10 = vweird.f32 %v1452_v12 }
 0xc77   :  { %vm883_vm12 = vmor %vm881_vm11, %vm882_vm10 }
 0xc78   :  { %v878_v14 = vsub.f32 1.0, %v877_v13 }
 0xc7a   :  { %v879_v16 = vmul.f32 %v1452_v12, %v878_v14 }
 0xc7c   :  { %v880_v18 = vadd.f32 %v1452_v12, %v879_v16 }
 0xc7e   :  { %v884_v20 = vsel %vm883_vm12, %v1452_v12, %v880_v18 }
 0xc7f   :  { %v889_v7 = vsel %vm886_vm13, %v888_v19, %v884_v20 }
 0xc80   :  { %v891_v21 = vmul.f32 2.0, %v889_v7  ;;  %v893_v42 = vmul.f32 %v889_v7, %v1755_v58 }
 0xc82   :  { %v1368_v22 = vadd.f32 -1.0, %v891_v21 }
 0xc84   :  { %895 = vrot.lane.b32.xlu1 %v1368_v22, %s1494_s23 }
 0xc85   :  { %v701_v23 = vpop.f32.mrf.mxu3 }
 0xc86   :  { %v702_v24 = vadd.f32 %v1609_v46, %v701_v23 }
 0xc88   :  { %v786_v27 = vadd.f32 %v785_v26, %v702_v24 }
 0xc8a   :  { %v1363_v28 = vmul.f32 -1.442695, %v786_v27 }
 0xc8c   :  { %1453 = vpow2.f32 %v1363_v28 }
 0xc92   :  { %v1454_v30 = vpop.eup %1453 }
 0xc93   :  { %v791_v32 = vadd.f32 1.0, %v1454_v30 }
 0xc95   :  { %1455 = vrcp.f32 %v791_v32  ;;  %v803_v44 = vand.u32 2147483648, %v791_v32  ;;  %v801_v48 = vand.u32 2147483647, %v791_v32  ;;  %vm797_vm15 = vweird.f32 %v791_v32 }
 0xc97   :  { %v804_v49 = vor.u32 1.1754944e-38, %v803_v44  ;;  %vm802_vm2 = vcmp.eq.f32.partialorder %v801_v48, 8.507059e+37 }
 0xc9b   :  { %v1456_v35 = vpop.eup %1455 }
 0xc9c   :  { %v793_v41 = vmul.f32 %v1456_v35, %v791_v32  ;;  %vm798_vm14 = vweird.f32 %v1456_v35 }
 0xc9d   :  { %vm799_vm1 = vmor %vm797_vm15, %vm798_vm14 }
 0xc9e   :  { %v794_v43 = vsub.f32 1.0, %v793_v41 }
 0xca0   :  { %v795_v45 = vmul.f32 %v1456_v35, %v794_v43 }
 0xca2   :  { %v796_v25 = vadd.f32 %v1456_v35, %v795_v45 }
 0xca4   :  { %v800_v50 = vsel %vm799_vm1, %v1456_v35, %v796_v25 }
 0xca5   :  { %v805_v29 = vsel %vm802_vm2, %v804_v49, %v800_v50 }
 0xca6   :  { %v807_v52 = vmul.f32 2.0, %v805_v29  ;;  %v809_v51 = vmul.f32 %v805_v29, %v1760_v61 }
 0xca8   :  { %v1364_v53 = vadd.f32 -1.0, %v807_v52 }
 0xcaa   :  { %811 = vrot.lane.b32.xlu0 %v1364_v53, %s1494_s23 }
 0xcf6   :  { %v896_v55 = vpop.permute.xlu1 %895 }
 0xcf7   :  { %v898_v56 = vmul.f32 %v896_v55, %v889_v7 }
 0xcf9   :  { %900 = vrot.lane.b32.xlu0 %v898_v56, %s1495_s24 }
 0xd1c   :  { %v812_v47 = vpop.permute.xlu0 %811 }
 0xd1d   :  { %v814_v57 = vmul.f32 %v812_v47, %v805_v29 }
 0xd1f   :  { %816 = vrot.lane.b32.xlu2 %v814_v57, %s1495_s24 }
 0xd6b   :  { %v901_v59 = vpop.permute.xlu0 %900 }
 0xd6c   :  { %v1792_v60 = vadd.f32 %v901_v59, %v893_v42 }
 0xd6e   :  { %1457 = vtanh.f32 %v1792_v60 }
 0xd74   :  { %v1458_v62 = vpop.eup %1457 }
 0xd75   :  { %906 = vrot.lane.b32.xlu2 %v1458_v62, %s1494_s23 }
 0xd79   :  { %v817_v63 = vpop.permute.xlu2 %816 }
 0xd7a   :  { %v1797_v2 = vadd.f32 %v817_v63, %v809_v51  ;;  %v43_v51 = vld [vmem:[%s1904_s0 + $0x38] sm:$0xff] }
 0xd7b   :  { %1331 = vmatmul.msk.f32.gmra.mxu0 %vm45_vm0, %v43_v51 }
 0xd7c   :  { %1459 = vtanh.f32 %v1797_v2 }
 0xd82   :  { %v1460_v3 = vpop.eup %1459 }
 0xd83   :  { %822 = vrot.lane.b32.xlu1 %v1460_v3, %s1494_s23 }
 0xdcf   :  { %v907_v54 = vpop.permute.xlu2 %906 }
 0xdd0   :  { %v909_v58 = vmul.f32 %v907_v54, %v889_v7 }
 0xdd2   :  { %911 = vrot.lane.b32.xlu1 %v909_v58, %s1495_s24 }
 0xdf5   :  { %v823_v8 = vpop.permute.xlu1 %822 }
 0xdf6   :  { %v825_v61 = vmul.f32 %v823_v8, %v805_v29 }
 0xdf8   :  { %827 = vrot.lane.b32.xlu0 %v825_v61, %s1495_s24  ;;  %v108_v58 = vpop.f32.mrf.mxu0 }
 0xe44   :  { %v912_v0 = vpop.permute.xlu1 %911 }
 0xe45   :  { %1369 = vmatmul.msk.f32.vlgmr.msrb.gmra.mxu2 %vm112_vm5, %v912_v0  ;;  %1373 = vmatmul.msk.f32.vlgmr.msra.gmra.mxu1 %vm112_vm5, %v912_v0 }
 0xe46   :  { %1221 = vmatpush.msrb.mxu2 %v1565_v33  ;;  %v1821_v33 = vld [vmem:[%s1903_s1 + $0x68] ss:$0 sm:$0xff] }
 0xe47   :  { %v109_v6 = vadd.f32 %v1821_v33, %v108_v58 }
 0xe48   :  { %1222 = vmatpush.msrb.mxu2 %v1570_v34  ;;  %v106_v34 = vadd.f32 %v1821_v33, %v105_v9  ;;  %v1492_v33 = vld [vmem:[%s1903_s1 + $0x70] ss:$0 sm:$0xff] }
 0xe4a   :  { %1223 = vmatpush.msrb.mxu2 %v1579_v36 }
 0xe4c   :  { %1224 = vmatpush.msrb.mxu2 %v1586_v37 }
 0xe6a   :  { %v828_v1 = vpop.permute.xlu0 %827 }
 0xe6b   :  { %1365 = vmatmul.msk.f32.vlgmr.msra.gmra.mxu3 %vm112_vm5, %v828_v1 }
 0xe6c   :  { %1137 = vmatpush.msra.mxu3 %v1629_v38 }
 0xe6e   :  { %1138 = vmatpush.msra.mxu3 %v1634_v31 }
 0xe70   :  { %1139 = vmatpush.msra.mxu3 %v1640_v39 }
 0xe72   :  { %1140 = vmatpush.msra.mxu3 %v1646_v40 }
 0xec2   :  { %v1015_v36 = vpop.f32.mrf.mxu1 }
 0xec3   :  { %v1018_v37 = vadd.f32 %v1015_v36, %v106_v34 }
 0xec5   :  { %v1374_v4 = vmul.f32 -1.442695, %v1018_v37 }
 0xec7   :  { %1461 = vpow2.f32 %v1374_v4 }
 0xec8   :  { %v932_v7 = vpop.f32.mrf.mxu2 }
 0xecd   :  { %v1462_v10 = vpop.eup %1461 }
 0xece   :  { %v1022_v38 = vadd.f32 1.0, %v1462_v10 }
 0xed0   :  { %1463 = vrcp.f32 %v1022_v38  ;;  %v1034_v5 = vand.u32 2147483648, %v1022_v38  ;;  %v1032_v12 = vand.u32 2147483647, %v1022_v38  ;;  %vm1028_vm4 = vweird.f32 %v1022_v38 }
 0xed2   :  { %v1035_v14 = vor.u32 1.1754944e-38, %v1034_v5  ;;  %vm1033_vm7 = vcmp.eq.f32.partialorder %v1032_v12, 8.507059e+37 }
 0xed6   :  { %v1464_v31 = vpop.eup %1463 }
 0xed7   :  { %v1024_v11 = vmul.f32 %v1464_v31, %v1022_v38  ;;  %vm1029_vm3 = vweird.f32 %v1464_v31 }
 0xed8   :  { %vm1030_vm6 = vmor %vm1028_vm4, %vm1029_vm3 }
 0xed9   :  { %v1025_v39 = vsub.f32 1.0, %v1024_v11 }
 0xedb   :  { %v1026_v40 = vmul.f32 %v1464_v31, %v1025_v39 }
 0xedd   :  { %v1027_v13 = vadd.f32 %v1464_v31, %v1026_v40 }
 0xedf   :  { %v1031_v15 = vsel %vm1030_vm6, %v1464_v31, %v1027_v13 }
 0xee0   :  { %v1036_v16 = vsel %vm1033_vm7, %v1035_v14, %v1031_v15 }
 0xee1   :  { %v1038_v17 = vmul.f32 2.0, %v1036_v16  ;;  %v1040_v52 = vmul.f32 %v1036_v16, %v1792_v60 }
 0xee3   :  { %v1375_v18 = vadd.f32 -1.0, %v1038_v17 }
 0xee5   :  { %1042 = vrot.lane.b32.xlu0 %v1375_v18, %s1494_s23 }
 0xeee   :  { %v848_v19 = vpop.f32.mrf.mxu3 }
 0xeef   :  { %v849_v20 = vadd.f32 %v1609_v46, %v848_v19 }
 0xef1   :  { %v933_v21 = vadd.f32 %v932_v7, %v849_v20 }
 0xef3   :  { %v1370_v22 = vmul.f32 -1.442695, %v933_v21 }
 0xef5   :  { %1465 = vpow2.f32 %v1370_v22 }
 0xefb   :  { %v1466_v23 = vpop.eup %1465 }
 0xefc   :  { %v938_v24 = vadd.f32 1.0, %v1466_v23 }
 0xefe   :  { %1467 = vrcp.f32 %v938_v24  ;;  %v950_v30 = vand.u32 2147483648, %v938_v24  ;;  %v948_v35 = vand.u32 2147483647, %v938_v24  ;;  %vm944_vm9 = vweird.f32 %v938_v24 }
 0xf00   :  { %v951_v43 = vor.u32 1.1754944e-38, %v950_v30  ;;  %vm949_vm11 = vcmp.eq.f32.partialorder %v948_v35, 8.507059e+37 }
 0xf04   :  { %v1468_v26 = vpop.eup %1467 }
 0xf05   :  { %v940_v27 = vmul.f32 %v1468_v26, %v938_v24  ;;  %vm945_vm8 = vweird.f32 %v1468_v26 }
 0xf06   :  { %vm946_vm10 = vmor %vm944_vm9, %vm945_vm8  ;;  %vm1318_vm9 = vcmask 7168  }
 0xf07   :  { %v941_v28 = vsub.f32 1.0, %v940_v27 }
 0xf09   :  { %v942_v32 = vmul.f32 %v1468_v26, %v941_v28 }
 0xf0b   :  { %v943_v41 = vadd.f32 %v1468_v26, %v942_v32 }
 0xf0d   :  { %v947_v44 = vsel %vm946_vm10, %v1468_v26, %v943_v41 }
 0xf0e   :  { %v952_v46 = vsel %vm949_vm11, %v951_v43, %v947_v44 }
 0xf0f   :  { %v954_v45 = vmul.f32 2.0, %v952_v46  ;;  %v956_v47 = vmul.f32 %v952_v46, %v1797_v2 }
 0xf11   :  { %v1371_v48 = vadd.f32 -1.0, %v954_v45 }
 0xf13   :  { %958 = vrot.lane.b32.xlu2 %v1371_v48, %s1494_s23 }
 0xf57   :  { %v1043_v25 = vpop.permute.xlu0 %1042 }
 0xf58   :  { %v1045_v49 = vmul.f32 %v1043_v25, %v1036_v16 }
 0xf5a   :  { %1047 = vrot.lane.b32.xlu2 %v1045_v49, %s1495_s24 }
 0xf6d   :  { %v959_v50 = vpop.permute.xlu2 %958 }
 0xf6e   :  { %v961_v29 = vmul.f32 %v959_v50, %v952_v46 }
 0xf70   :  { %963 = vrot.lane.b32.xlu1 %v961_v29, %s1495_s24 }
 0xfb4   :  { %v1048_v53 = vpop.permute.xlu2 %1047 }
 0xfb5   :  { %v1830_v55 = vadd.f32 %v1048_v53, %v1040_v52 }
 0xfb7   :  { %1469 = vtanh.f32 %v1830_v55 }
 0xfbd   :  { %v1470_v56 = vpop.eup %1469 }
 0xfbe   :  { %1053 = vrot.lane.b32.xlu1 %v1470_v56, %s1494_s23 }
 0xfe2   :  { %v964_v57 = vpop.permute.xlu1 %963 }
 0xfe3   :  { %v1835_v42 = vadd.f32 %v964_v57, %v956_v47 }
 0xfe5   :  { %1471 = vtanh.f32 %v1835_v42 }
 0xfeb   :  { %v1472_v59 = vpop.eup %1471 }
 0xfec   :  { %969 = vrot.lane.b32.xlu0 %v1472_v59, %s1494_s23 }
0x1030   :  { %v1054_v62 = vpop.permute.xlu1 %1053 }
0x1031   :  { %v1056_v60 = vmul.f32 %v1054_v62, %v1036_v16 }
0x1033   :  { %1058 = vrot.lane.b32.xlu0 %v1056_v60, %s1495_s24 }
0x105e   :  { %v970_v63 = vpop.permute.xlu0 %969 }
0x105f   :  { %v972_v2 = vmul.f32 %v970_v63, %v952_v46 }
0x1061   :  { %974 = vrot.lane.b32.xlu2 %v972_v2, %s1495_s24 }
0x10a5   :  { %v1059_v3 = vpop.permute.xlu0 %1058 }
0x10a6   :  { %1376 = vmatmul.msk.f32.vlgmr.msra.gmra.mxu2 %vm112_vm5, %v1059_v3  ;;  %1380 = vmatmul.msk.f32.vlgmr.msrb.gmra.mxu1 %vm112_vm5, %v1059_v3 }
0x10bb   :  { %v975_v54 = vpop.permute.xlu2 %974 }
0x10bc   :  { %1372 = vmatmul.msk.f32.vlgmr.msrb.gmra.mxu3 %vm112_vm5, %v975_v54 }
0x1123   :  { %v1162_v8 = vpop.f32.mrf.mxu1 }
0x1124   :  { %v1165_v61 = vadd.f32 %v1162_v8, %v109_v6 }
0x1126   :  { %v1381_v0 = vmul.f32 -1.442695, %v1165_v61 }
0x1128   :  { %1473 = vpow2.f32 %v1381_v0 }
0x1129   :  { %v1079_v12 = vpop.f32.mrf.mxu2 }
0x112e   :  { %v1474_v1 = vpop.eup %1473 }
0x112f   :  { %v1169_v9 = vadd.f32 1.0, %v1474_v1 }
0x1131   :  { %1475 = vrcp.f32 %v1169_v9  ;;  %v1181_v4 = vand.u32 2147483648, %v1169_v9  ;;  %v1179_v38 = vand.u32 2147483647, %v1169_v9  ;;  %vm1175_vm12 = vweird.f32 %v1169_v9 }
0x1133   :  { %v1182_v39 = vor.u32 1.1754944e-38, %v1181_v4  ;;  %vm1180_vm14 = vcmp.eq.f32.partialorder %v1179_v38, 8.507059e+37 }
0x1137   :  { %v1476_v34 = vpop.eup %1475 }
0x1138   :  { %v1171_v36 = vmul.f32 %v1476_v34, %v1169_v9  ;;  %vm1176_vm0 = vweird.f32 %v1476_v34 }
0x1139   :  { %vm1177_vm13 = vmor %vm1175_vm12, %vm1176_vm0 }
0x113a   :  { %v1172_v37 = vsub.f32 1.0, %v1171_v36 }
0x113c   :  { %v1173_v10 = vmul.f32 %v1476_v34, %v1172_v37 }
0x113e   :  { %v1174_v31 = vadd.f32 %v1476_v34, %v1173_v10 }
0x113f   :  { %v995_v11 = vpop.f32.mrf.mxu3 }
0x1140   :  { %v996_v5 = vadd.f32 %v1492_v33, %v995_v11  ;;  %v1178_v40 = vsel %vm1177_vm13, %v1476_v34, %v1174_v31 }
0x1141   :  { %v1183_v13 = vsel %vm1180_vm14, %v1182_v39, %v1178_v40  ;;  %v29_v40 = vld [vmem:[%s1903_s1 + $0x90] sm:$0xff] }
0x1142   :  { %v1080_v14 = vadd.f32 %v1079_v12, %v996_v5  ;;  %v1185_v15 = vmul.f32 2.0, %v1183_v13  ;;  %v1187_v45 = vmul.f32 %v1183_v13, %v1830_v55  ;;  %v28_v12 = vld [vmem:[%s1903_s1 + $0x88] sm:$0xff]  ;;  %1285 = vmatpush.msrb.mxu3 %v29_v40 }
0x1144   :  { %v1377_v16 = vmul.f32 -1.442695, %v1080_v14  ;;  %v1382_v17 = vadd.f32 -1.0, %v1185_v15  ;;  %1286 = vmatpush.msrb.mxu3 %v28_v12  ;;  %v26_v14 = vld [vmem:[%s1903_s1 + $0x78] sm:$0xff] }
0x1146   :  { %1477 = vpow2.f32 %v1377_v16  ;;  %1189 = vrot.lane.b32.xlu2 %v1382_v17, %s1494_s23  ;;  %v34_v17 = vld [vmem:[%s1903_s1 + $0xb8] sm:$0xff] }
0x1147   :  { %1310 = vmatpush.msrb.mxu0 %v34_v17 }
0x114c   :  { %v1478_v18 = vpop.eup %1477 }
0x114d   :  { %v1085_v19 = vadd.f32 1.0, %v1478_v18  ;;  %v33_v18 = vld [vmem:[%s1903_s1 + $0xb0] sm:$0xff] }
0x114e   :  { %1311 = vmatpush.msrb.mxu0 %v33_v18 }
0x114f   :  { %1479 = vrcp.f32 %v1085_v19  ;;  %v1097_v22 = vand.u32 2147483648, %v1085_v19  ;;  %v1095_v24 = vand.u32 2147483647, %v1085_v19  ;;  %vm1091_vm1 = vweird.f32 %v1085_v19 }
0x1151   :  { %v1098_v27 = vor.u32 1.1754944e-38, %v1097_v22  ;;  %vm1096_vm3 = vcmp.eq.f32.partialorder %v1095_v24, 8.507059e+37 }
0x1155   :  { %v1480_v20 = vpop.eup %1479 }
0x1156   :  { %v1087_v7 = vmul.f32 %v1480_v20, %v1085_v19  ;;  %vm1092_vm15 = vweird.f32 %v1480_v20  ;;  %v32_v19 = vld [vmem:[%s1903_s1 + $0xa8] sm:$0xff] }
0x1157   :  { %vm1093_vm2 = vmor %vm1091_vm1, %vm1092_vm15  ;;  %1312 = vmatpush.msrb.mxu0 %v32_v19 }
0x1158   :  { %v1088_v21 = vsub.f32 1.0, %v1087_v7 }
0x115a   :  { %v1089_v23 = vmul.f32 %v1480_v20, %v1088_v21  ;;  %v1393_v21 = vld [vmem:[%s1903_s1 + $0x98] ss:$0 sm:$0xff] }
0x115c   :  { %v1090_v26 = vadd.f32 %v1480_v20, %v1089_v23 }
0x115e   :  { %v1094_v28 = vsel %vm1093_vm2, %v1480_v20, %v1090_v26  ;;  %v31_v20 = vld [vmem:[%s1903_s1 + $0xa0] sm:$0xff] }
0x115f   :  { %v1099_v30 = vsel %vm1096_vm3, %v1098_v27, %v1094_v28  ;;  %1313 = vmatpush.msrb.mxu0 %v31_v20  ;;  %v1394_v26 = vld [vmem:[%s1903_s1 + $0xc0] ss:$0 sm:$0xff] }
0x1160   :  { %v1101_v32 = vmul.f32 2.0, %v1099_v30  ;;  %v1103_v50 = vmul.f32 %v1099_v30, %v1835_v42 }
0x1162   :  { %v1378_v35 = vadd.f32 -1.0, %v1101_v32 }
0x1164   :  { %1105 = vrot.lane.b32.xlu1 %v1378_v35, %s1494_s23 }
0x11a0   :  { %v1190_v41 = vpop.permute.xlu2 %1189 }
0x11a1   :  { %v1192_v43 = vmul.f32 %v1190_v41, %v1183_v13 }
0x11a3   :  { %1194 = vrot.lane.b32.xlu1 %v1192_v43, %s1495_s24 }
0x11d6   :  { %v1106_v44 = vpop.permute.xlu1 %1105 }
0x11d7   :  { %v1108_v46 = vmul.f32 %v1106_v44, %v1099_v30 }
0x11d9   :  { %1110 = vrot.lane.b32.xlu0 %v1108_v46, %s1495_s24 }
0x1215   :  { %v1195_v48 = vpop.permute.xlu1 %1194 }
0x1216   :  { %v1197_v25 = vadd.f32 %v1195_v48, %v1187_v45 }
0x1218   :  { %1481 = vtanh.f32 %v1197_v25 }
0x121e   :  { %v1482_v49 = vpop.eup %1481 }
0x121f   :  { %1200 = vrot.lane.b32.xlu0 %v1482_v49, %s1494_s23 }
0x124b   :  { %v1111_v29 = vpop.permute.xlu0 %1110 }
0x124c   :  { %v1113_v52 = vadd.f32 %v1111_v29, %v1103_v50 }
0x124e   :  { %1483 = vtanh.f32 %v1113_v52 }
0x1254   :  { %v1484_v53 = vpop.eup %1483 }
0x1255   :  { %1116 = vrot.lane.b32.xlu2 %v1484_v53, %s1494_s23 }
0x1291   :  { %v1201_v56 = vpop.permute.xlu0 %1200 }
0x1292   :  { %v1203_v47 = vmul.f32 %v1201_v56, %v1183_v13  ;;  %v27_v13 = vld [vmem:[%s1903_s1 + $0x80] sm:$0xff] }
0x1293   :  { %1287 = vmatpush.msrb.mxu3 %v27_v13 }
0x1294   :  { %1205 = vrot.lane.b32.xlu2 %v1203_v47, %s1495_s24 }
0x1295   :  { %1288 = vmatpush.msrb.mxu3 %v26_v14 }
0x12af   :  { %v1117_v57 = vpop.permute.xlu2 %1116 }
0x12b0   :  { %v1119_v55 = vmul.f32 %v1117_v57, %v1099_v30 }
0x12b2   :  { %1121 = vrot.lane.b32.xlu1 %v1119_v55, %s1495_s24 }
0x12ee   :  { %v1206_v59 = vpop.permute.xlu2 %1205 }
0x12ef   :  { %1383 = vmatmul.msk.f32.vlgmr.msrb.gmra.mxu2 %vm112_vm5, %v1206_v59 }
0x1324   :  { %v1122_v62 = vpop.permute.xlu1 %1121 }
0x1325   :  { %1379 = vmatmul.msk.f32.vlgmr.msra.gmra.mxu3 %vm112_vm5, %v1122_v62 }
0x1372   :  { %v1226_v51 = vpop.f32.mrf.mxu2 }
0x13a8   :  { %v1142_v42 = vpop.f32.mrf.mxu3 }
0x13a9   :  { %v1143_v60 = vadd.f32 %v1492_v33, %v1142_v42 }
0x13ab   :  { %v1227_v63 = vadd.f32 %v1226_v51, %v1143_v60 }
0x13ad   :  { %v1384_v2 = vmul.f32 -1.442695, %v1227_v63 }
0x13af   :  { %1485 = vpow2.f32 %v1384_v2 }
0x13b5   :  { %v1486_v3 = vpop.eup %1485 }
0x13b6   :  { %v1232_v54 = vadd.f32 1.0, %v1486_v3 }
0x13b8   :  { %1487 = vrcp.f32 %v1232_v54  ;;  %v1244_v61 = vand.u32 2147483648, %v1232_v54  ;;  %v1242_v1 = vand.u32 2147483647, %v1232_v54  ;;  %vm1238_vm6 = vweird.f32 %v1232_v54 }
0x13ba   :  { %v1245_v34 = vor.u32 1.1754944e-38, %v1244_v61  ;;  %vm1243_vm8 = vcmp.eq.f32.partialorder %v1242_v1, 8.507059e+37 }
0x13be   :  { %v1488_v58 = vpop.eup %1487 }
0x13bf   :  { %v1234_v6 = vmul.f32 %v1488_v58, %v1232_v54  ;;  %vm1239_vm4 = vweird.f32 %v1488_v58 }
0x13c0   :  { %vm1240_vm7 = vmor %vm1238_vm6, %vm1239_vm4 }
0x13c1   :  { %v1235_v8 = vsub.f32 1.0, %v1234_v6 }
0x13c3   :  { %v1236_v0 = vmul.f32 %v1488_v58, %v1235_v8 }
0x13c5   :  { %v1237_v9 = vadd.f32 %v1488_v58, %v1236_v0 }
0x13c7   :  { %v1241_v36 = vsel %vm1240_vm7, %v1488_v58, %v1237_v9 }
0x13c8   :  { %v1246_v37 = vsel %vm1243_vm8, %v1245_v34, %v1241_v36 }
0x13c9   :  { %v1248_v4 = vmul.f32 2.0, %v1246_v37  ;;  %v1250_v11 = vmul.f32 %v1246_v37, %v1113_v52 }
0x13cb   :  { %v1385_v10 = vadd.f32 -1.0, %v1248_v4 }
0x13cd   :  { %1252 = vrot.lane.b32.xlu0 %v1385_v10, %s1494_s23 }
0x143f   :  { %v1253_v38 = vpop.permute.xlu0 %1252 }
0x1440   :  { %v1255_v31 = vmul.f32 %v1253_v38, %v1246_v37 }
0x1442   :  { %1257 = vrot.lane.b32.xlu1 %v1255_v31, %s1495_s24 }
0x14b4   :  { %v1258_v39 = vpop.permute.xlu1 %1257 }
0x14b5   :  { %v1260_v33 = vadd.f32 %v1258_v39, %v1250_v11 }
0x14b7   :  { %1489 = vtanh.f32 %v1260_v33 }
0x14bd   :  { %v1490_v5 = vpop.eup %1489 }
0x14be   :  { %1263 = vrot.lane.b32.xlu2 %v1490_v5, %s1494_s23 }
0x1518   :  { %v1264_v15 = vpop.permute.xlu2 %1263 }
0x1519   :  { %v1266_v16 = vmul.f32 %v1264_v15, %v1246_v37 }
0x151b   :  { %1269 = vrot.lane.b32.xlu0 %v1266_v16, %s1495_s24 }
0x158d   :  { %v1270_v7 = vpop.permute.xlu0 %1269 }
0x158e   :  { %1386 = vmatmul.msk.f32.vlgmr.msrb.gmra.mxu3 %vm112_vm5, %v1270_v7 }
0x1611   :  { %v1290_v22 = vpop.f32.mrf.mxu3 }
0x1612   :  { %v1291_v23 = vadd.f32 %v1393_v21, %v1290_v22 }
0x1614   :  { %v1293_v24 = vmax.f32 %v1291_v23, 0.0 }
0x1616   :  { %1387 = vmatmul.msk.f32.vlgmr.msrb.gmra.mxu0 %vm112_vm5, %v1293_v24 }
0x1693   :  { %v1315_v27 = vpop.f32.mrf.mxu0 }
0x1694   :  { %v1316_v28 = vadd.f32 %v1394_v26, %v1315_v27 }
0x1696   :  { %1319 = vst.msk [vmem:[%s1905_s2] sm:$0xff] %vm1318_vm9, %v1316_v28 }

</bundles_post_ra>
